<compile_context>
chip_gen: v6e
topology: v6e:2x2x1
jax: 0.10.0
libtpu: 0.0.40
codegen_flags: <defaults>
</compile_context>

<pallas_src>
import jax
import jax.numpy as jnp
from jax import lax
from jax.experimental import pallas as pl
from jax.experimental.pallas import tpu as pltpu

# ----------------------------- model hyper-params ---------------------------
EMB_DIM   = 24     # args.emb_dim (divisible by num_heads = 6)
NUM_HEADS = 6
HEAD_DIM  = EMB_DIM // NUM_HEADS
FEAT_DIM  = 32     # dset.feat_dim
IE_HIDDEN = 64     # image_embedder hidden (args.fc_emb='64', nlayers=2)
CP_HIDDEN = 256    # comp_proj hidden (4096 in the paper; scaled down for toy run)
BATCH     = 2
N_ATTRS   = 5
N_OBJS    = 6
N_PAIRS   = 8

LANE = 128         # TPU lane width
EP   = LANE        # padded emb dim
FP   = LANE        # padded image-feature dim
IEP  = LANE        # padded image-embedder hidden dim

# ----------------------------- packed-bias layout ---------------------------
BIAS_COLS = 3 * EP          # widest row (packed qkv bias)
BIAS_ROWS = 16              # sublane-aligned
(_R_PB, _R_LNG, _R_LNB, _R_QKVB, _R_OB,
 _R_CB1, _R_CB2, _R_CB3, _R_IB1, _R_IB2) = range(10)


# ------------------------------- fused kernel -------------------------------
def _cape_fused_kernel(
    pair_ref,            # (P, EP)  f32  [attr | obj | 0-pad] in lanes
    img_ref,             # (B, FP)  f32
    bias_ref,            # (BIAS_ROWS, BIAS_COLS) f32 packed biases
    hm_ref,              # (H, 1, EP) f32 head lane-group mask
    pw_ref,              # (EP, EP)        bf16  fused compose projection
    qkvw_ref,            # (EP, 3*EP)      bf16  packed q|k|v projection
    ow_ref,              # (EP, EP)        bf16  attention out projection
    cw1_ref, cw2_ref, cw3_ref,             # bf16 comp_proj
    iw1_ref, iw2_ref,                      # bf16 image_embedder
    score_ref,           # (B, P) f32
):
    f32 = jnp.float32
    P = pair_ref.shape[0]

    bias = bias_ref[...]
    pb   = bias[_R_PB:_R_PB + 1, :EP]
    ln_g = bias[_R_LNG:_R_LNG + 1, :EP]
    ln_b = bias[_R_LNB:_R_LNB + 1, :EP]
    qkvb = bias[_R_QKVB:_R_QKVB + 1, :]
    ob   = bias[_R_OB:_R_OB + 1, :EP]
    cb1  = bias[_R_CB1:_R_CB1 + 1, :CP_HIDDEN]
    cb2  = bias[_R_CB2:_R_CB2 + 1, :CP_HIDDEN]
    cb3  = bias[_R_CB3:_R_CB3 + 1, :EP]
    ib1  = bias[_R_IB1:_R_IB1 + 1, :IEP]
    ib2  = bias[_R_IB2:_R_IB2 + 1, :EP]

    hm = hm_ref[...]                                   # (H, 1, EP)
    emb_mask = jnp.sum(hm, axis=0)                     # (1, EP): 1 on lanes < EMB_DIM

    # ---- compose(): Linear(cat([attr_emb, obj_emb], 1)) then F.normalize ----
    z = jnp.dot(pair_ref[...], pw_ref[...].astype(f32),
                preferred_element_type=f32) + pb
    z = z * lax.rsqrt(jnp.maximum(jnp.sum(z * z, axis=1, keepdims=True), 1e-24))

    # ---- nn.LayerNorm(EMB_DIM); padded lanes of z / ln_g / ln_b are 0 -------
    inv_e = 1.0 / EMB_DIM
    mu = jnp.sum(z, axis=1, keepdims=True) * inv_e
    zc = (z - mu) * emb_mask
    var = jnp.sum(zc * zc, axis=1, keepdims=True) * inv_e
    h = zc * lax.rsqrt(var + 1e-5) * ln_g + ln_b       # (P, EP), padded lanes 0

    # ---- 6-head self-attention -----------------------------------------------
    # Single packed QKV projection: one well-shaped (P,128)@(128,384) MXU op.
    qkv = jnp.dot(h, qkvw_ref[...].astype(f32), preferred_element_type=f32) + qkvb
    q = qkv[:, 0:EP]
    k = qkv[:, EP:2 * EP]
    v = qkv[:, 2 * EP:3 * EP]

    # Per-head scores via a lane-group mask on K (head h occupies lanes
    # h*HEAD_DIM .. h*HEAD_DIM+HEAD_DIM-1, matching the reference layout).
    km = k[None, :, :] * hm                            # (H, P, EP)
    qb3 = jnp.broadcast_to(q[None, :, :], (NUM_HEADS, P, EP))
    s = jnp.einsum('hqe,hke->hqk', qb3, km,
                   preferred_element_type=f32) * (1.0 / (HEAD_DIM ** 0.5))
    s = s - jnp.max(s, axis=-1, keepdims=True)
    aw = jnp.exp(s)
    aw = aw * pl.reciprocal(jnp.sum(aw, axis=-1, keepdims=True), approx=True)

    vb3 = jnp.broadcast_to(v[None, :, :], (NUM_HEADS, P, EP))
    ctx_h = jnp.einsum('hqk,hke->hqe', aw, vb3, preferred_element_type=f32)
    ctx = jnp.sum(ctx_h * hm, axis=0)                  # (P, EP), heads in lane groups

    attn = jnp.dot(ctx, ow_ref[...].astype(f32),
                   preferred_element_type=f32) + ob
    a = attn + h                                       # residual

    # ---- comp_proj: 3 x (Linear + ReLU) --------------------------------------
    y = jnp.maximum(jnp.dot(a, cw1_ref[...].astype(f32),
                            preferred_element_type=f32) + cb1, 0.0)
    y = jnp.maximum(jnp.dot(y, cw2_ref[...].astype(f32),
                            preferred_element_type=f32) + cb2, 0.0)
    y = jnp.maximum(jnp.dot(y, cw3_ref[...].astype(f32),
                            preferred_element_type=f32) + cb3, 0.0)  # (P, EP)

    # ---- image_embedder MLP + F.normalize -------------------------------------
    him = jnp.maximum(jnp.dot(img_ref[...], iw1_ref[...].astype(f32),
                              preferred_element_type=f32) + ib1, 0.0)
    f = jnp.dot(him, iw2_ref[...].astype(f32), preferred_element_type=f32) + ib2
    fn = f * lax.rsqrt(jnp.maximum(jnp.sum(f * f, axis=1, keepdims=True), 1e-24))

    # ---- score = img_normed @ pair_out.T  (transpose folded into dot_general) --
    score_ref[...] = lax.dot_general(
        fn, y, dimension_numbers=(((1,), (1,)), ((), ())),
        preferred_element_type=f32)


# ------------------------------ pallas_call glue ----------------------------
def cape_val_forward(img, val_attrs, val_objs, pp):
    # embedding gathers + lane packing are glue (plain JAX)
    attr_e = pp["attr_table"][val_attrs]                       # (P, E)
    obj_e = pp["obj_table"][val_objs]                          # (P, E)
    pair_in = jnp.concatenate([attr_e, obj_e], axis=1)         # (P, 2E)
    pair_in = jnp.pad(pair_in, ((0, 0), (0, EP - 2 * EMB_DIM)))  # (P, EP)
    img_p = jnp.pad(img, ((0, 0), (0, FP - img.shape[1])))     # (B, FP)

    args = (pair_in, img_p, pp["bias_pack"], pp["head_mask"],
            pp["proj_w"], pp["qkv_w"], pp["out_w"],
            pp["cw1"], pp["cw2"], pp["cw3"],
            pp["iw1"], pp["iw2"])

    vmem = pl.BlockSpec(memory_space=pltpu.MemorySpace.VMEM)
    return pl.pallas_call(
        _cape_fused_kernel,
        out_shape=jax.ShapeDtypeStruct((img.shape[0], pair_in.shape[0]),
                                       jnp.float32),
        in_specs=[vmem] * len(args),
        out_specs=vmem,
    )(*args)


# ----------------------------- deterministic init ---------------------------
def init_params(key):
    ks = jax.random.split(key, 16)

    def dense(k, fi, fo):
        w = jax.random.normal(k, (fi, fo), jnp.float32) / jnp.sqrt(fi)
        # round-trip through bf16 so the kernel's bf16 weights are lossless
        return w.astype(jnp.bfloat16).astype(jnp.float32)

    return {
        "attr_table": jax.random.normal(ks[0], (N_ATTRS, EMB_DIM), jnp.float32),
        "obj_table":  jax.random.normal(ks[1], (N_OBJS, EMB_DIM), jnp.float32),
        "proj_w": dense(ks[2], 2 * EMB_DIM, EMB_DIM),
        "proj_b": 0.01 * jnp.ones((1, EMB_DIM), jnp.float32),
        "ln_g": jnp.ones((1, EMB_DIM), jnp.float32),
        "ln_b": jnp.zeros((1, EMB_DIM), jnp.float32),
        "in_w": dense(ks[3], EMB_DIM, 3 * EMB_DIM),
        "in_b": jnp.zeros((1, 3 * EMB_DIM), jnp.float32),
        "out_w": dense(ks[4], EMB_DIM, EMB_DIM),
        "out_b": jnp.zeros((1, EMB_DIM), jnp.float32),
        "cp_w1": dense(ks[5], EMB_DIM, CP_HIDDEN),
        "cp_b1": 0.01 * jnp.ones((1, CP_HIDDEN), jnp.float32),
        "cp_w2": dense(ks[6], CP_HIDDEN, CP_HIDDEN),
        "cp_b2": 0.01 * jnp.ones((1, CP_HIDDEN), jnp.float32),
        "cp_w3": dense(ks[7], CP_HIDDEN, EMB_DIM),
        "cp_b3": 0.01 * jnp.ones((1, EMB_DIM), jnp.float32),
        "ie_w1": dense(ks[8], FEAT_DIM, IE_HIDDEN),
        "ie_b1": 0.01 * jnp.ones((1, IE_HIDDEN), jnp.float32),
        "ie_w2": dense(ks[9], IE_HIDDEN, EMB_DIM),
        "ie_b2": 0.01 * jnp.ones((1, EMB_DIM), jnp.float32),
    }


def _padw(w, rows, cols):
    out = jnp.zeros((rows, cols), jnp.float32)
    return out.at[:w.shape[0], :w.shape[1]].set(w)


def prep_padded_params(p):
    """Lane-pad and bf16-cast all weights; pack all 1-row biases into one ref."""
    E = EMB_DIM
    bf16 = jnp.bfloat16

    # fused compose projection: input lanes [attr(0..23) | obj(24..47) | 0]
    proj_w = _padw(p["proj_w"], EP, EP)

    # packed QKV weight: lane blocks [q: 0..127 | k: 128..255 | v: 256..383]
    qkv_w = jnp.zeros((EP, 3 * EP), jnp.float32)
    qkv_w = qkv_w.at[:E, 0:E].set(p["in_w"][:, :E])
    qkv_w = qkv_w.at[:E, EP:EP + E].set(p["in_w"][:, E:2 * E])
    qkv_w = qkv_w.at[:E, 2 * EP:2 * EP + E].set(p["in_w"][:, 2 * E:])

    out_w = _padw(p["out_w"], EP, EP)
    cw1 = _padw(p["cp_w1"], EP, CP_HIDDEN)
    cw2 = p["cp_w2"]
    cw3 = _padw(p["cp_w3"], CP_HIDDEN, EP)
    iw1 = _padw(p["ie_w1"], FP, IEP)
    iw2 = _padw(p["ie_w2"], IEP, EP)

    bias = jnp.zeros((BIAS_ROWS, BIAS_COLS), jnp.float32)
    bias = bias.at[_R_PB, :E].set(p["proj_b"][0])
    bias = bias.at[_R_LNG, :E].set(p["ln_g"][0])
    bias = bias.at[_R_LNB, :E].set(p["ln_b"][0])
    in_b = p["in_b"][0]
    bias = bias.at[_R_QKVB, 0:E].set(in_b[:E])
    bias = bias.at[_R_QKVB, EP:EP + E].set(in_b[E:2 * E])
    bias = bias.at[_R_QKVB, 2 * EP:2 * EP + E].set(in_b[2 * E:])
    bias = bias.at[_R_OB, :E].set(p["out_b"][0])
    bias = bias.at[_R_CB1, :CP_HIDDEN].set(p["cp_b1"][0])
    bias = bias.at[_R_CB2, :CP_HIDDEN].set(p["cp_b2"][0])
    bias = bias.at[_R_CB3, :E].set(p["cp_b3"][0])
    bias = bias.at[_R_IB1, :IE_HIDDEN].set(p["ie_b1"][0])
    bias = bias.at[_R_IB2, :E].set(p["ie_b2"][0])

    # head lane-group mask: head h owns lanes h*HEAD_DIM .. h*HEAD_DIM+HEAD_DIM-1
    lane = jnp.arange(EP)
    head = jnp.arange(NUM_HEADS)
    head_mask = ((lane[None, :] // HEAD_DIM) == head[:, None]).astype(jnp.float32)
    head_mask = head_mask[:, None, :]                  # (H, 1, EP)

    return {
        "attr_table": p["attr_table"],
        "obj_table": p["obj_table"],
        "bias_pack": bias,
        "head_mask": head_mask,
        "proj_w": proj_w.astype(bf16),
        "qkv_w": qkv_w.astype(bf16),
        "out_w": out_w.astype(bf16),
        "cw1": cw1.astype(bf16),
        "cw2": cw2.astype(bf16),
        "cw3": cw3.astype(bf16),
        "iw1": iw1.astype(bf16),
        "iw2": iw2.astype(bf16),
    }


# ------------------------------- pure-JAX reference -------------------------
def reference(img, val_attrs, val_objs, p):
    E = EMB_DIM
    attr_e = p["attr_table"][val_attrs]
    obj_e = p["obj_table"][val_objs]
    z = jnp.concatenate([attr_e, obj_e], axis=1) @ p["proj_w"] + p["proj_b"]
    z = z / jnp.maximum(jnp.linalg.norm(z, axis=1, keepdims=True), 1e-12)
    mu = z.mean(1, keepdims=True)
    var = ((z - mu) ** 2).mean(1, keepdims=True)
    h = (z - mu) / jnp.sqrt(var + 1e-5) * p["ln_g"] + p["ln_b"]
    qkv = h @ p["in_w"] + p["in_b"]
    q, k, v = qkv[:, :E], qkv[:, E:2 * E], qkv[:, 2 * E:]
    P_ = h.shape[0]
    q3 = q.reshape(P_, NUM_HEADS, HEAD_DIM).transpose(1, 0, 2)
    k3 = k.reshape(P_, NUM_HEADS, HEAD_DIM).transpose(1, 0, 2)
    v3 = v.reshape(P_, NUM_HEADS, HEAD_DIM).transpose(1, 0, 2)
    s = (q3 @ k3.transpose(0, 2, 1)) / (HEAD_DIM ** 0.5)
    w = jax.nn.softmax(s, axis=-1)
    ctx = (w @ v3).transpose(1, 0, 2).reshape(P_, E)
    attn = ctx @ p["out_w"] + p["out_b"]
    a = attn + h
    y = jax.nn.relu(a @ p["cp_w1"] + p["cp_b1"])
    y = jax.nn.relu(y @ p["cp_w2"] + p["cp_b2"])
    y = jax.nn.relu(y @ p["cp_w3"] + p["cp_b3"])
    hh = jax.nn.relu(img @ p["ie_w1"] + p["ie_b1"])
    f = hh @ p["ie_w2"] + p["ie_b2"]
    fn = f / jnp.maximum(jnp.linalg.norm(f, axis=1, keepdims=True), 1e-12)
    return fn @ y.T


# ------------------------------------ main -----------------------------------
if __name__ == "__main__":
    key = jax.random.PRNGKey(0)
    k_param, k_img = jax.random.split(key)
    params = init_params(k_param)
    padded = prep_padded_params(params)

    # synthetic (attr, obj) pair table, as produced by get_all_ids(dset.pairs)
    val_attrs = jnp.array([0, 1, 2, 3, 4, 0, 1, 2], dtype=jnp.int32)
    val_objs = jnp.array([0, 1, 2, 3, 4, 5, 0, 1], dtype=jnp.int32)

    img = jax.random.normal(k_img, (BATCH, FEAT_DIM), jnp.float32)

    fwd = jax.jit(cape_val_forward)
    score = fwd(img, val_attrs, val_objs, padded)
    score = jax.block_until_ready(score)

    # mimic the scores-dict returned by val_forward (glue)
    scores = {("attr%d" % int(a), "obj%d" % int(o)): score[:, i]
              for i, (a, o) in enumerate(zip(val_attrs, val_objs))}

    ref = reference(img, val_attrs, val_objs, params)
    assert score.shape == (BATCH, N_PAIRS)
    max_err = jnp.max(jnp.abs(score - ref))
    assert jnp.allclose(score, ref, atol=1e-2, rtol=1e-2), (
        f"mismatch: max abs err {max_err}")

    print("KERNEL_OK")
</pallas_src>

<mosaic_0001>
module attributes {stable_mosaic.version = 11 : i64} {
  func.func @_cape_fused_kernel(%arg0: memref<8x128xf32, #tpu.memory_space<vmem>>, %arg1: memref<2x128xf32, #tpu.memory_space<vmem>>, %arg2: memref<16x384xf32, #tpu.memory_space<vmem>>, %arg3: memref<6x1x128xf32, #tpu.memory_space<vmem>>, %arg4: memref<128x128xbf16, #tpu.memory_space<vmem>>, %arg5: memref<128x384xbf16, #tpu.memory_space<vmem>>, %arg6: memref<128x128xbf16, #tpu.memory_space<vmem>>, %arg7: memref<128x256xbf16, #tpu.memory_space<vmem>>, %arg8: memref<256x256xbf16, #tpu.memory_space<vmem>>, %arg9: memref<256x128xbf16, #tpu.memory_space<vmem>>, %arg10: memref<128x128xbf16, #tpu.memory_space<vmem>>, %arg11: memref<128x128xbf16, #tpu.memory_space<vmem>>, %arg12: memref<2x8xf32, #tpu.memory_space<vmem>>) attributes {dimension_semantics = [], scalar_prefetch = 0 : i64, scratch_operands = 0 : i64, tpu.core_type = #tpu.core_type<tc>} {
    %c0 = arith.constant 0 : index
    %c0_0 = arith.constant 0 : index
    %0 = vector.load %arg2[%c0, %c0_0] : memref<16x384xf32, #tpu.memory_space<vmem>>, vector<16x384xf32>
    %1 = vector.extract_strided_slice %0 {offsets = [0, 0], sizes = [1, 128], strides = [1, 1]} : vector<16x384xf32> to vector<1x128xf32>
    %2 = vector.extract_strided_slice %0 {offsets = [1, 0], sizes = [1, 128], strides = [1, 1]} : vector<16x384xf32> to vector<1x128xf32>
    %3 = vector.extract_strided_slice %0 {offsets = [2, 0], sizes = [1, 128], strides = [1, 1]} : vector<16x384xf32> to vector<1x128xf32>
    %4 = vector.extract_strided_slice %0 {offsets = [3, 0], sizes = [1, 384], strides = [1, 1]} : vector<16x384xf32> to vector<1x384xf32>
    %5 = vector.extract_strided_slice %0 {offsets = [4, 0], sizes = [1, 128], strides = [1, 1]} : vector<16x384xf32> to vector<1x128xf32>
    %6 = vector.extract_strided_slice %0 {offsets = [5, 0], sizes = [1, 256], strides = [1, 1]} : vector<16x384xf32> to vector<1x256xf32>
    %7 = vector.extract_strided_slice %0 {offsets = [6, 0], sizes = [1, 256], strides = [1, 1]} : vector<16x384xf32> to vector<1x256xf32>
    %8 = vector.extract_strided_slice %0 {offsets = [7, 0], sizes = [1, 128], strides = [1, 1]} : vector<16x384xf32> to vector<1x128xf32>
    %9 = vector.extract_strided_slice %0 {offsets = [8, 0], sizes = [1, 128], strides = [1, 1]} : vector<16x384xf32> to vector<1x128xf32>
    %10 = vector.extract_strided_slice %0 {offsets = [9, 0], sizes = [1, 128], strides = [1, 1]} : vector<16x384xf32> to vector<1x128xf32>
    %c0_1 = arith.constant 0 : index
    %c0_2 = arith.constant 0 : index
    %c0_3 = arith.constant 0 : index
    %11 = vector.load %arg3[%c0_1, %c0_2, %c0_3] : memref<6x1x128xf32, #tpu.memory_space<vmem>>, vector<6x1x128xf32>
    %cst = arith.constant dense<0.000000e+00> : vector<1x128xf32>
    %12 = vector.multi_reduction <add>, %11, %cst [0] : vector<6x1x128xf32> to vector<1x128xf32>
    %c0_4 = arith.constant 0 : index
    %c0_5 = arith.constant 0 : index
    %13 = vector.load %arg0[%c0_4, %c0_5] : memref<8x128xf32, #tpu.memory_space<vmem>>, vector<8x128xf32>
    %c0_6 = arith.constant 0 : index
    %c0_7 = arith.constant 0 : index
    %14 = vector.load %arg4[%c0_6, %c0_7] : memref<128x128xbf16, #tpu.memory_space<vmem>>, vector<128x128xbf16>
    %15 = arith.extf %14 : vector<128x128xbf16> to vector<128x128xf32>
    %cst_8 = arith.constant dense<0.000000e+00> : vector<8x128xf32>
    %16 = tpu.matmul %13, %15, %cst_8 {dimension_numbers = #tpu.dot_dimension_numbers<[1], [0], [0], [1], [0, 0, 1, 1], [], []>} : vector<8x128xf32>, vector<128x128xf32>, vector<8x128xf32> -> vector<8x128xf32>
    %17 = vector.broadcast %1 : vector<1x128xf32> to vector<8x128xf32>
    %18 = arith.addf %16, %17 : vector<8x128xf32>
    %19 = arith.mulf %18, %18 : vector<8x128xf32>
    %cst_9 = arith.constant dense<0.000000e+00> : vector<8xf32>
    %20 = vector.multi_reduction <add>, %19, %cst_9 [1] : vector<8x128xf32> to vector<8xf32>
    %21 = vector.shape_cast %20 : vector<8xf32> to vector<8x1xf32>
    %cst_10 = arith.constant 1.000000e-24 : f32
    %22 = vector.broadcast %cst_10 : f32 to vector<8x1xf32>
    %23 = arith.maximumf %21, %22 : vector<8x1xf32>
    %24 = math.rsqrt %23 : vector<8x1xf32>
    %25 = vector.broadcast %24 : vector<8x1xf32> to vector<8x128xf32>
    %26 = arith.mulf %18, %25 : vector<8x128xf32>
    %cst_11 = arith.constant dense<0.000000e+00> : vector<8xf32>
    %27 = vector.multi_reduction <add>, %26, %cst_11 [1] : vector<8x128xf32> to vector<8xf32>
    %28 = vector.shape_cast %27 : vector<8xf32> to vector<8x1xf32>
    %cst_12 = arith.constant 0.0416666679 : f32
    %29 = vector.broadcast %cst_12 : f32 to vector<8x1xf32>
    %30 = arith.mulf %28, %29 : vector<8x1xf32>
    %31 = vector.broadcast %30 : vector<8x1xf32> to vector<8x128xf32>
    %32 = arith.subf %26, %31 : vector<8x128xf32>
    %33 = vector.broadcast %12 : vector<1x128xf32> to vector<8x128xf32>
    %34 = arith.mulf %32, %33 : vector<8x128xf32>
    %35 = arith.mulf %34, %34 : vector<8x128xf32>
    %cst_13 = arith.constant dense<0.000000e+00> : vector<8xf32>
    %36 = vector.multi_reduction <add>, %35, %cst_13 [1] : vector<8x128xf32> to vector<8xf32>
    %37 = vector.shape_cast %36 : vector<8xf32> to vector<8x1xf32>
    %cst_14 = arith.constant 0.0416666679 : f32
    %38 = vector.broadcast %cst_14 : f32 to vector<8x1xf32>
    %39 = arith.mulf %37, %38 : vector<8x1xf32>
    %cst_15 = arith.constant 9.99999974E-6 : f32
    %40 = vector.broadcast %cst_15 : f32 to vector<8x1xf32>
    %41 = arith.addf %39, %40 : vector<8x1xf32>
    %42 = math.rsqrt %41 : vector<8x1xf32>
    %43 = vector.broadcast %42 : vector<8x1xf32> to vector<8x128xf32>
    %44 = arith.mulf %34, %43 : vector<8x128xf32>
    %45 = vector.broadcast %2 : vector<1x128xf32> to vector<8x128xf32>
    %46 = arith.mulf %44, %45 : vector<8x128xf32>
    %47 = vector.broadcast %3 : vector<1x128xf32> to vector<8x128xf32>
    %48 = arith.addf %46, %47 : vector<8x128xf32>
    %c0_16 = arith.constant 0 : index
    %c0_17 = arith.constant 0 : index
    %49 = vector.load %arg5[%c0_16, %c0_17] : memref<128x384xbf16, #tpu.memory_space<vmem>>, vector<128x384xbf16>
    %50 = arith.extf %49 : vector<128x384xbf16> to vector<128x384xf32>
    %cst_18 = arith.constant dense<0.000000e+00> : vector<8x384xf32>
    %51 = tpu.matmul %48, %50, %cst_18 {dimension_numbers = #tpu.dot_dimension_numbers<[1], [0], [0], [1], [0, 0, 1, 1], [], []>} : vector<8x128xf32>, vector<128x384xf32>, vector<8x384xf32> -> vector<8x384xf32>
    %52 = vector.broadcast %4 : vector<1x384xf32> to vector<8x384xf32>
    %53 = arith.addf %51, %52 : vector<8x384xf32>
    %54 = vector.extract_strided_slice %53 {offsets = [0, 0], sizes = [8, 128], strides = [1, 1]} : vector<8x384xf32> to vector<8x128xf32>
    %55 = vector.extract_strided_slice %53 {offsets = [0, 128], sizes = [8, 128], strides = [1, 1]} : vector<8x384xf32> to vector<8x128xf32>
    %56 = vector.extract_strided_slice %53 {offsets = [0, 256], sizes = [8, 128], strides = [1, 1]} : vector<8x384xf32> to vector<8x128xf32>
    %57 = vector.shape_cast %55 : vector<8x128xf32> to vector<1x8x128xf32>
    %58 = vector.broadcast %57 : vector<1x8x128xf32> to vector<6x8x128xf32>
    %59 = vector.broadcast %11 : vector<6x1x128xf32> to vector<6x8x128xf32>
    %60 = arith.mulf %58, %59 : vector<6x8x128xf32>
    %61 = vector.shape_cast %54 : vector<8x128xf32> to vector<1x8x128xf32>
    %62 = vector.shape_cast %61 : vector<1x8x128xf32> to vector<1x8x128xf32>
    %63 = vector.broadcast %62 : vector<1x8x128xf32> to vector<6x8x128xf32>
    "tpu.trace_start"() <{level = 10 : i32, message = "hqe,hke->hqk"}> : () -> ()
    %cst_19 = arith.constant dense<0.000000e+00> : vector<6x8x8xf32>
    %64 = tpu.matmul %63, %60, %cst_19 {dimension_numbers = #tpu.dot_dimension_numbers<[2], [2], [1], [1], [0, 0, 0, 1, 1, 1], [0], [0]>} : vector<6x8x128xf32>, vector<6x8x128xf32>, vector<6x8x8xf32> -> vector<6x8x8xf32>
    "tpu.trace_stop"() : () -> ()
    %cst_20 = arith.constant 5.000000e-01 : f32
    %65 = vector.broadcast %cst_20 : f32 to vector<6x8x8xf32>
    %66 = arith.mulf %64, %65 : vector<6x8x8xf32>
    %cst_21 = arith.constant dense<0xFF800000> : vector<6x8xf32>
    %67 = vector.multi_reduction <maximumf>, %66, %cst_21 [2] : vector<6x8x8xf32> to vector<6x8xf32>
    %68 = vector.shape_cast %67 : vector<6x8xf32> to vector<6x8x1xf32>
    %69 = vector.broadcast %68 : vector<6x8x1xf32> to vector<6x8x8xf32>
    %70 = arith.subf %66, %69 : vector<6x8x8xf32>
    %71 = math.exp %70 : vector<6x8x8xf32>
    %cst_22 = arith.constant dense<0.000000e+00> : vector<6x8xf32>
    %72 = vector.multi_reduction <add>, %71, %cst_22 [2] : vector<6x8x8xf32> to vector<6x8xf32>
    %73 = vector.shape_cast %72 : vector<6x8xf32> to vector<6x8x1xf32>
    %74 = tpu.reciprocal %73 {approx = true} : vector<6x8x1xf32> -> vector<6x8x1xf32>
    %75 = vector.broadcast %74 : vector<6x8x1xf32> to vector<6x8x8xf32>
    %76 = arith.mulf %71, %75 : vector<6x8x8xf32>
    %77 = vector.shape_cast %56 : vector<8x128xf32> to vector<1x8x128xf32>
    %78 = vector.shape_cast %77 : vector<1x8x128xf32> to vector<1x8x128xf32>
    %79 = vector.broadcast %78 : vector<1x8x128xf32> to vector<6x8x128xf32>
    "tpu.trace_start"() <{level = 10 : i32, message = "hqk,hke->hqe"}> : () -> ()
    %cst_23 = arith.constant dense<0.000000e+00> : vector<6x8x128xf32>
    %80 = tpu.matmul %76, %79, %cst_23 {dimension_numbers = #tpu.dot_dimension_numbers<[2], [1], [1], [2], [0, 0, 0, 1, 1, 2], [0], [0]>} : vector<6x8x8xf32>, vector<6x8x128xf32>, vector<6x8x128xf32> -> vector<6x8x128xf32>
    "tpu.trace_stop"() : () -> ()
    %81 = vector.broadcast %11 : vector<6x1x128xf32> to vector<6x8x128xf32>
    %82 = arith.mulf %80, %81 : vector<6x8x128xf32>
    %cst_24 = arith.constant dense<0.000000e+00> : vector<8x128xf32>
    %83 = vector.multi_reduction <add>, %82, %cst_24 [0] : vector<6x8x128xf32> to vector<8x128xf32>
    %c0_25 = arith.constant 0 : index
    %c0_26 = arith.constant 0 : index
    %84 = vector.load %arg6[%c0_25, %c0_26] : memref<128x128xbf16, #tpu.memory_space<vmem>>, vector<128x128xbf16>
    %85 = arith.extf %84 : vector<128x128xbf16> to vector<128x128xf32>
    %cst_27 = arith.constant dense<0.000000e+00> : vector<8x128xf32>
    %86 = tpu.matmul %83, %85, %cst_27 {dimension_numbers = #tpu.dot_dimension_numbers<[1], [0], [0], [1], [0, 0, 1, 1], [], []>} : vector<8x128xf32>, vector<128x128xf32>, vector<8x128xf32> -> vector<8x128xf32>
    %87 = vector.broadcast %5 : vector<1x128xf32> to vector<8x128xf32>
    %88 = arith.addf %86, %87 : vector<8x128xf32>
    %89 = arith.addf %88, %48 : vector<8x128xf32>
    %c0_28 = arith.constant 0 : index
    %c0_29 = arith.constant 0 : index
    %90 = vector.load %arg7[%c0_28, %c0_29] : memref<128x256xbf16, #tpu.memory_space<vmem>>, vector<128x256xbf16>
    %91 = arith.extf %90 : vector<128x256xbf16> to vector<128x256xf32>
    %cst_30 = arith.constant dense<0.000000e+00> : vector<8x256xf32>
    %92 = tpu.matmul %89, %91, %cst_30 {dimension_numbers = #tpu.dot_dimension_numbers<[1], [0], [0], [1], [0, 0, 1, 1], [], []>} : vector<8x128xf32>, vector<128x256xf32>, vector<8x256xf32> -> vector<8x256xf32>
    %93 = vector.broadcast %6 : vector<1x256xf32> to vector<8x256xf32>
    %94 = arith.addf %92, %93 : vector<8x256xf32>
    %cst_31 = arith.constant 0.000000e+00 : f32
    %95 = vector.broadcast %cst_31 : f32 to vector<8x256xf32>
    %96 = arith.maximumf %94, %95 : vector<8x256xf32>
    %c0_32 = arith.constant 0 : index
    %c0_33 = arith.constant 0 : index
    %97 = vector.load %arg8[%c0_32, %c0_33] : memref<256x256xbf16, #tpu.memory_space<vmem>>, vector<256x256xbf16>
    %98 = arith.extf %97 : vector<256x256xbf16> to vector<256x256xf32>
    %cst_34 = arith.constant dense<0.000000e+00> : vector<8x256xf32>
    %99 = tpu.matmul %96, %98, %cst_34 {dimension_numbers = #tpu.dot_dimension_numbers<[1], [0], [0], [1], [0, 0, 1, 1], [], []>} : vector<8x256xf32>, vector<256x256xf32>, vector<8x256xf32> -> vector<8x256xf32>
    %100 = vector.broadcast %7 : vector<1x256xf32> to vector<8x256xf32>
    %101 = arith.addf %99, %100 : vector<8x256xf32>
    %cst_35 = arith.constant 0.000000e+00 : f32
    %102 = vector.broadcast %cst_35 : f32 to vector<8x256xf32>
    %103 = arith.maximumf %101, %102 : vector<8x256xf32>
    %c0_36 = arith.constant 0 : index
    %c0_37 = arith.constant 0 : index
    %104 = vector.load %arg9[%c0_36, %c0_37] : memref<256x128xbf16, #tpu.memory_space<vmem>>, vector<256x128xbf16>
    %105 = arith.extf %104 : vector<256x128xbf16> to vector<256x128xf32>
    %cst_38 = arith.constant dense<0.000000e+00> : vector<8x128xf32>
    %106 = tpu.matmul %103, %105, %cst_38 {dimension_numbers = #tpu.dot_dimension_numbers<[1], [0], [0], [1], [0, 0, 1, 1], [], []>} : vector<8x256xf32>, vector<256x128xf32>, vector<8x128xf32> -> vector<8x128xf32>
    %107 = vector.broadcast %8 : vector<1x128xf32> to vector<8x128xf32>
    %108 = arith.addf %106, %107 : vector<8x128xf32>
    %cst_39 = arith.constant 0.000000e+00 : f32
    %109 = vector.broadcast %cst_39 : f32 to vector<8x128xf32>
    %110 = arith.maximumf %108, %109 : vector<8x128xf32>
    %c0_40 = arith.constant 0 : index
    %c0_41 = arith.constant 0 : index
    %111 = vector.load %arg1[%c0_40, %c0_41] : memref<2x128xf32, #tpu.memory_space<vmem>>, vector<2x128xf32>
    %c0_42 = arith.constant 0 : index
    %c0_43 = arith.constant 0 : index
    %112 = vector.load %arg10[%c0_42, %c0_43] : memref<128x128xbf16, #tpu.memory_space<vmem>>, vector<128x128xbf16>
    %113 = arith.extf %112 : vector<128x128xbf16> to vector<128x128xf32>
    %cst_44 = arith.constant dense<0.000000e+00> : vector<2x128xf32>
    %114 = tpu.matmul %111, %113, %cst_44 {dimension_numbers = #tpu.dot_dimension_numbers<[1], [0], [0], [1], [0, 0, 1, 1], [], []>} : vector<2x128xf32>, vector<128x128xf32>, vector<2x128xf32> -> vector<2x128xf32>
    %115 = vector.broadcast %9 : vector<1x128xf32> to vector<2x128xf32>
    %116 = arith.addf %114, %115 : vector<2x128xf32>
    %cst_45 = arith.constant 0.000000e+00 : f32
    %117 = vector.broadcast %cst_45 : f32 to vector<2x128xf32>
    %118 = arith.maximumf %116, %117 : vector<2x128xf32>
    %c0_46 = arith.constant 0 : index
    %c0_47 = arith.constant 0 : index
    %119 = vector.load %arg11[%c0_46, %c0_47] : memref<128x128xbf16, #tpu.memory_space<vmem>>, vector<128x128xbf16>
    %120 = arith.extf %119 : vector<128x128xbf16> to vector<128x128xf32>
    %cst_48 = arith.constant dense<0.000000e+00> : vector<2x128xf32>
    %121 = tpu.matmul %118, %120, %cst_48 {dimension_numbers = #tpu.dot_dimension_numbers<[1], [0], [0], [1], [0, 0, 1, 1], [], []>} : vector<2x128xf32>, vector<128x128xf32>, vector<2x128xf32> -> vector<2x128xf32>
    %122 = vector.broadcast %10 : vector<1x128xf32> to vector<2x128xf32>
    %123 = arith.addf %121, %122 : vector<2x128xf32>
    %124 = arith.mulf %123, %123 : vector<2x128xf32>
    %cst_49 = arith.constant dense<0.000000e+00> : vector<2xf32>
    %125 = vector.multi_reduction <add>, %124, %cst_49 [1] : vector<2x128xf32> to vector<2xf32>
    %126 = vector.shape_cast %125 : vector<2xf32> to vector<2x1xf32>
    %cst_50 = arith.constant 1.000000e-24 : f32
    %127 = vector.broadcast %cst_50 : f32 to vector<2x1xf32>
    %128 = arith.maximumf %126, %127 : vector<2x1xf32>
    %129 = math.rsqrt %128 : vector<2x1xf32>
    %130 = vector.broadcast %129 : vector<2x1xf32> to vector<2x128xf32>
    %131 = arith.mulf %123, %130 : vector<2x128xf32>
    %cst_51 = arith.constant dense<0.000000e+00> : vector<2x8xf32>
    %132 = tpu.matmul %131, %110, %cst_51 {dimension_numbers = #tpu.dot_dimension_numbers<[1], [1], [0], [0], [0, 0, 1, 0], [], []>} : vector<2x128xf32>, vector<8x128xf32>, vector<2x8xf32> -> vector<2x8xf32>
    %c0_52 = arith.constant 0 : index
    %c0_53 = arith.constant 0 : index
    %133 = vector.load %arg12[%c0_52, %c0_53] : memref<2x8xf32, #tpu.memory_space<vmem>>, vector<2x8xf32>
    tpu.vector_store %arg12[%c0_52, %c0_53], %132 {strides = array<i32>} : memref<2x8xf32, #tpu.memory_space<vmem>>, vector<2x8xf32>,
    return
  }
}

</mosaic_0001>

<bundles_post_ra>
// kernel: cape_val_forward.1
= control target key start
LH: loop header
LB: loop body
LE: loop exit
PB: predicated region body
PF: predicated region fallthrough
CT: control target
= control target key end

     0   :  { %17 = vsyncpa [#allocation3], 0  ;;  %s3672_s0 = inlined_call_operand.vmem [shape: f32[8,128], index: 0, kind: input, shape index: {}]   ;;  %s3673_s1 = inlined_call_operand.vmem [shape: f32[2,128], index: 1, kind: input, shape index: {}]   ;;  %s3674_s2 = inlined_call_operand.hbm [shape: f32[16,384], index: 2, kind: input, shape index: {}]   ;;  %s3675_s3 = inlined_call_operand.vmem [shape: f32[6,1,128], index: 3, kind: input, shape index: {}]   ;;  %s3676_s4 = inlined_call_operand.vmem [shape: bf16[128,128], index: 4, kind: input, shape index: {}]   ;;  %s3677_s5 = inlined_call_operand.hbm [shape: bf16[128,384], index: 5, kind: input, shape index: {}]   ;;  %s3678_s6 = inlined_call_operand.vmem [shape: bf16[128,128], index: 6, kind: input, shape index: {}]   ;;  %s3679_s7 = inlined_call_operand.hbm [shape: bf16[128,256], index: 7, kind: input, shape index: {}]   ;;  %s3680_s8 = inlined_call_operand.hbm [shape: bf16[256,256], index: 8, kind: input, shape index: {}]   ;;  %s3681_s9 = inlined_call_operand.hbm [shape: bf16[256,128], index: 9, kind: input, shape index: {}]   ;;  %s3682_s10 = inlined_call_operand.hbm [shape: bf16[128,128], index: 10, kind: input, shape index: {}]   ;;  %s3683_s11 = inlined_call_operand.hbm [shape: bf16[128,128], index: 11, kind: input, shape index: {}]   ;;  %s3684_s12 = inlined_call_operand.hbm [shape: f32[2,8], index: 12, kind: output, shape index: {}]  }
   0x1   :  { %18 = vsyncpa [#allocation6], 0 }
   0x2   :  { %19 = vsyncpa [#allocation9], 0 }
   0x3   :  { %20 = vsyncpa [#allocation12], 0 }
   0x4   :  { %21 = vsyncpa [#allocation4], 0  ;;  %s3226_s21 = smov [#allocation5]  }
   0x5   :  { %s47_s22 = sshll.u32 %s3226_s21, 4  ;;  %s48_s22 = int_to_ptr.vmem [resolvable:$true] %s47_s22 }
   0x6   :  { %s3064_s23 = scalar_lea.vmem %s48_s22, 3072  ;;  %p3069_p1 = scmp.lt.s32.totalorder %s48_s22, %s48_s22 }
   0x7   :  { %p3065_p0 = scmp.ne.s32.totalorder %s48_s22, %s3064_s23  ;;  %p3070_p2 = scmp.lt.s32.totalorder %s3064_s23, %s3064_s23 }
   0x9   :  { %p3071_p3 = por %p3070_p2, %p3069_p1 }
   0xb   :  { %p3072_p4 = pnand %p3071_p3, %p3065_p0 }
   0xd   :  { %3075 = shalt.err (!%p3072_p4)
}
   0xe   :  { %s3227_s24 = smov 192   ;;  %s3228_s25 = smov 12  }
   0xf   :  { %53 = dma.hbm_to_vmem [thread:$0]  %s3677_s5, 3072, %s48_s22, [#allocation6], %s3227_s24, %s3227_s24, %s3228_s25  }
  0x10   :  { %s3229_s28 = smov [#allocation8]  }
  0x11   :  { %s73_s29 = sshll.u32 %s3229_s28, 4  ;;  %s74_s29 = int_to_ptr.vmem [resolvable:$true] %s73_s29 }
  0x12   :  { %s3084_s30 = scalar_lea.vmem %s74_s29, 4096  ;;  %p3089_p6 = scmp.lt.s32.totalorder %s74_s29, %s74_s29 }
  0x13   :  { %p3085_p5 = scmp.ne.s32.totalorder %s74_s29, %s3084_s30  ;;  %p3090_p7 = scmp.lt.s32.totalorder %s3084_s30, %s3084_s30 }
  0x15   :  { %p3091_p8 = por %p3090_p7, %p3089_p6 }
  0x17   :  { %p3092_p9 = pnand %p3091_p8, %p3085_p5 }
  0x19   :  { %3095 = shalt.err (!%p3092_p9)
}
  0x1a   :  { %s3230_s13 = smov 128   ;;  %s3231_s14 = smov 8  }
  0x1b   :  { %79 = dma.hbm_to_vmem [thread:$0]  %s3680_s8, 4096, %s74_s29, [#allocation9], %s3230_s13, %s3230_s13, %s3231_s14  }
  0x1c   :  { %s3232_s5 = smov [#allocation11]   ;;  %s3233_s18 = smov [#allocation2]  }
  0x1d   :  { %s97_s17 = sshll.u32 %s3232_s5, 4  ;;  %s31_s19 = sshll.u32 %s3233_s18, 4  ;;  %s98_s17 = int_to_ptr.vmem [resolvable:$true] %s97_s17  ;;  %s32_s19 = int_to_ptr.vmem [resolvable:$true] %s31_s19 }
  0x1e   :  { %s3104_s20 = scalar_lea.vmem %s98_s17, 1024  ;;  %p3109_p11 = scmp.lt.s32.totalorder %s98_s17, %s98_s17 }
  0x1f   :  { %p3105_p10 = scmp.ne.s32.totalorder %s98_s17, %s3104_s20  ;;  %p3110_p12 = scmp.lt.s32.totalorder %s3104_s20, %s3104_s20 }
  0x21   :  { %p3111_p13 = por %p3110_p12, %p3109_p11 }
  0x23   :  { %p3112_p0 = pnand %p3111_p13, %p3105_p10 }
  0x25   :  { %3115 = shalt.err (!%p3112_p0)
}
  0x26   :  { %s3234_s21 = smov 64   ;;  %s3235_s22 = smov 4  }
  0x27   :  { %103 = dma.hbm_to_vmem [thread:$0]  %s3682_s10, 1024, %s98_s17, [#allocation12], %s3234_s21, %s3234_s21, %s3235_s22  }
  0x28   :  { %s3124_s24 = scalar_lea.vmem %s32_s19, 768  ;;  %p3129_p2 = scmp.lt.s32.totalorder %s32_s19, %s32_s19 }
  0x29   :  { %p3125_p1 = scmp.ne.s32.totalorder %s32_s19, %s3124_s24  ;;  %p3130_p3 = scmp.lt.s32.totalorder %s3124_s24, %s3124_s24 }
  0x2b   :  { %p3131_p4 = por %p3130_p3, %p3129_p2 }
  0x2d   :  { %p3132_p5 = pnand %p3131_p4, %p3125_p1 }
  0x2f   :  { %3135 = shalt.err (!%p3132_p5)
}
  0x30   :  { %s3236_s25 = smov 384   ;;  %s3237_s26 = smov 24  }
  0x31   :  { %37 = dma.hbm_to_vmem [thread:$0]  %s3674_s2, 768, %s32_s19, [#allocation3], %s3236_s25, %s3236_s25, %s3237_s26  }
  0x32   :  { %s3238_s29 = smov [#allocation7]   ;;  %s3239_s15 = smov [#allocation10]  }
  0x33   :  { %s61_s30 = sshll.u32 %s3238_s29, 4  ;;  %s85_s16 = sshll.u32 %s3239_s15, 4  ;;  %s62_s30 = int_to_ptr.vmem [resolvable:$true] %s61_s30  ;;  %s86_s16 = int_to_ptr.vmem [resolvable:$true] %s85_s16 }
  0x34   :  { %s3144_s10 = scalar_lea.vmem %s62_s30, 2048  ;;  %p3149_p7 = scmp.lt.s32.totalorder %s62_s30, %s62_s30 }
  0x35   :  { %p3145_p6 = scmp.ne.s32.totalorder %s62_s30, %s3144_s10  ;;  %p3150_p8 = scmp.lt.s32.totalorder %s3144_s10, %s3144_s10 }
  0x37   :  { %p3151_p9 = por %p3150_p8, %p3149_p7 }
  0x39   :  { %p3152_p10 = pnand %p3151_p9, %p3145_p6 }
  0x3b   :  { %3155 = shalt.err (!%p3152_p10)
}
  0x3c   :  { %67 = dma.hbm_to_vmem [thread:$0]  %s3679_s7, 2048, %s62_s30, [#allocation6], %s3230_s13, %s3230_s13, %s3231_s14  }
  0x3d   :  { %s3164_s2 = scalar_lea.vmem %s86_s16, 2048  ;;  %p3169_p12 = scmp.lt.s32.totalorder %s86_s16, %s86_s16 }
  0x3e   :  { %p3165_p11 = scmp.ne.s32.totalorder %s86_s16, %s3164_s2  ;;  %p3170_p13 = scmp.lt.s32.totalorder %s3164_s2, %s3164_s2 }
  0x40   :  { %p3171_p0 = por %p3170_p13, %p3169_p12 }
  0x42   :  { %p3172_p1 = pnand %p3171_p0, %p3165_p11 }
  0x44   :  { %3175 = shalt.err (!%p3172_p1)
}
  0x45   :  { %91 = dma.hbm_to_vmem [thread:$0]  %s3681_s9, 2048, %s86_s16, [#allocation9], %s3234_s21, %s3234_s21, %s3235_s22  }
  0x46   :  { %s3240_s20 = smov [#allocation13]  }
  0x47   :  { %s109_s23 = sshll.u32 %s3240_s20, 4  ;;  %s110_s23 = int_to_ptr.vmem [resolvable:$true] %s109_s23 }
  0x48   :  { %s3184_s8 = scalar_lea.vmem %s110_s23, 1024  ;;  %p3189_p3 = scmp.lt.s32.totalorder %s110_s23, %s110_s23 }
  0x49   :  { %p3185_p2 = scmp.ne.s32.totalorder %s110_s23, %s3184_s8  ;;  %p3190_p4 = scmp.lt.s32.totalorder %s3184_s8, %s3184_s8 }
  0x4b   :  { %p3191_p5 = por %p3190_p4, %p3189_p3 }
  0x4d   :  { %p3192_p6 = pnand %p3191_p5, %p3185_p2 }
  0x4f   :  { %3195 = shalt.err (!%p3192_p6)
}
  0x50   :  { %115 = dma.hbm_to_vmem [thread:$0]  %s3683_s11, 1024, %s110_s23, [#allocation12], %s3234_s21, %s3234_s21, %s3235_s22  }
  0x51   :  { %3216 = dma.done.wait [#allocation3], 768  }
  0x52   :  { %3217 = vsyncadd [#allocation3], 4294966528 }
  0x53   :  { %3218 = dma.done.wait [#allocation6], 5120  }
  0x54   :  { %3219 = vsyncadd [#allocation6], 4294962176 }
  0x55   :  { %3220 = dma.done.wait [#allocation9], 6144  }
  0x56   :  { %3221 = vsyncadd [#allocation9], 4294961152 }
  0x57   :  { %3222 = dma.done.wait [#allocation12], 2048  }
  0x58   :  { %3223 = vsyncadd [#allocation12], 4294965248  ;;  %v3241_v0 = vmov 0.0   ;;  %vm3242_vm0 = vmmov 0   ;;  %v2583_v1 = vld [vmem:[%s3676_s4 + $0x38] sm:$0xff]   ;;  %v2582_v2 = vld [vmem:[%s3676_s4 + $0x30] sm:$0xff]   ;;  %v192_v26 = vlaneseq }
  0x59   :  { %2766 = vmatprep.subr.mxu0 %v3241_v0  ;;  %2798 = vmatprep.mubr.msk.f32.mxu0 %vm3242_vm0, %v3241_v0  ;;  %v2415_v3 = vunpack.c.l.bf16 %v2583_v1  ;;  %v2416_v4 = vunpack.c.h.bf16 %v2583_v1  ;;  %v2412_v5 = vunpack.c.h.bf16 %v2582_v2  ;;  %v2581_v6 = vld [vmem:[%s3676_s4 + $0x28] sm:$0xff]   ;;  %v2411_v7 = vunpack.c.l.bf16 %v2582_v2  ;;  %v2580_v9 = vld [vmem:[%s3676_s4 + $0x20] sm:$0xff]   ;;  %v2579_v12 = vld [vmem:[%s3676_s4 + $0x18] sm:$0xff]  }
  0x5a   :  { %454 = vmatprep.mubr.f32.mxu1 %v3241_v0  ;;  %v2408_v8 = vunpack.c.h.bf16 %v2581_v6  ;;  %v2407_v10 = vunpack.c.l.bf16 %v2581_v6  ;;  %v2404_v11 = vunpack.c.h.bf16 %v2580_v9  ;;  %v2403_v13 = vunpack.c.l.bf16 %v2580_v9  ;;  %v2578_v15 = vld [vmem:[%s3676_s4 + $0x10] sm:$0xff]   ;;  %v2577_v18 = vld [vmem:[%s3676_s4 + $0x8] sm:$0xff]   ;;  %v2386_v21 = vld [vmem:[%s3676_s4] sm:$0xff]  }
  0x5b   :  { %2767 = vmatpush3.msra.mxu0 %v2416_v4  ;;  %v2400_v14 = vunpack.c.h.bf16 %v2579_v12  ;;  %v2399_v16 = vunpack.c.l.bf16 %v2579_v12  ;;  %v2396_v17 = vunpack.c.h.bf16 %v2578_v15  ;;  %v2395_v19 = vunpack.c.l.bf16 %v2578_v15  ;;  %v159_v25 = vld [vmem:[%s3672_s0] sm:$0xff]  ;;  %v326_v41 = vld [vmem:[#allocation5 + $0xa8] sm:$0xff]  ;;  %v324_v46 = vld [vmem:[#allocation5 + $0x9c] sm:$0xff] }
  0x5c   :  { %2768 = vmatprep.subr.mxu0 %v3241_v0  ;;  %v2392_v20 = vunpack.c.h.bf16 %v2577_v18  ;;  %v2391_v22 = vunpack.c.l.bf16 %v2577_v18  ;;  %v2388_v23 = vunpack.c.h.bf16 %v2386_v21  ;;  %v2387_v24 = vunpack.c.l.bf16 %v2386_v21  ;;  %v3399_v29 = vld [vmem:[#allocation2] sm:$0xff]  ;;  %v325_v47 = vld [vmem:[#allocation5 + $0x98] ss:$12 sps:$4 sm:$0xff]  }
  0x5d   :  { %2769 = vmatpush3.msra.mxu0 %v2415_v3  ;;  %v3394_v27 = vshrl.u32 %v192_v26, 7  ;;  %v328_v39 = vld [vmem:[#allocation5 + $0xb4] sm:$0xff]  ;;  %v329_v40 = vld [vmem:[#allocation5 + $0xb0] ss:$12 sps:$4 sm:$0xff]   ;;  %v373_v45 = vunpack.c.h.bf16 %v326_v41  ;;  %v372_v48 = vunpack.c.l.bf16 %v326_v41  ;;  %v370_v51 = vunpack.c.h.bf16 %v324_v46 }
  0x5e   :  { %2770 = vmatprep.subr.mxu0 %v3241_v0  ;;  %v376_v42 = vunpack.c.h.bf16 %v328_v39  ;;  %v375_v43 = vunpack.c.l.bf16 %v328_v39  ;;  %v377_v44 = vunpack.c.h.bf16 %v329_v40  ;;  %v374_v49 = vunpack.c.l.bf16 %v329_v40  ;;  %v322_v50 = vld [vmem:[#allocation5 + $0x90] sm:$0xff]  ;;  %v310_v40 = vld [vmem:[#allocation5 + $0x48] sm:$0xff] }
  0x5f   :  { %2771 = vmatpush3.msra.mxu0 %v2412_v5  ;;  %v3397_v28 = vsub.s32 0, %v3394_v27  ;;  %v371_v52 = vunpack.c.h.bf16 %v325_v47  ;;  %v369_v53 = vunpack.c.l.bf16 %v324_v46  ;;  %v367_v54 = vunpack.c.h.bf16 %v322_v50  ;;  %v3410_v57 = vld [vmem:[%s3675_s3] sm:$0x1]  ;;  %v3415_v58 = vld [vmem:[%s3675_s3 + $0x1] sm:$0x1] }
  0x60   :  { %2772 = vmatprep.subr.mxu0 %v3241_v0  ;;  %390 = vmatprep.subr.mxu1 %v376_v42  ;;  %v368_v55 = vunpack.c.l.bf16 %v325_v47  ;;  %v366_v56 = vunpack.c.l.bf16 %v322_v50  ;;  %vm147_vm1 = vcmask 1040384   ;;  %v3422_v61 = vld [vmem:[%s3675_s3 + $0x2] sm:$0x1]  ;;  %v3428_v1 = vld [vmem:[%s3675_s3 + $0x3] sm:$0x1]  ;;  %v348_v47 = vunpack.c.l.bf16 %v310_v40 }
  0x61   :  { %2773 = vmatpush3.msra.mxu0 %v2411_v7  ;;  %v195_v30 = vrot.slane %v3399_v29, %v3397_v28  ;;  %391 = vmatpush1.msra.mxu1 %v375_v43  ;;  %v148_v59 = vsel %vm147_vm1, %v3410_v57, 0.0  ;;  %v149_v60 = vsel %vm147_vm1, %v3415_v58, 0.0  ;;  %v151_v63 = vsel %vm147_vm1, %v3422_v61, 0.0  ;;  %v3434_v4 = vld [vmem:[%s3675_s3 + $0x4] sm:$0x1]  ;;  %v316_v26 = vld [vmem:[#allocation5 + $0x6c] sm:$0xff] }
  0x62   :  { %2774 = vmatprep.subr.mxu0 %v3241_v0  ;;  %392 = vmatprep.subr.mxu1 %v373_v45  ;;  %v150_v62 = vadd.f32 %v149_v60, %v148_v59  ;;  %v153_v3 = vsel %vm147_vm1, %v3428_v1, 0.0  ;;  %v155_v6 = vsel %vm147_vm1, %v3434_v4, 0.0  ;;  %v3440_v7 = vld [vmem:[%s3675_s3 + $0x5] sm:$0x1]  ;;  %v313_v39 = vld [vmem:[#allocation5 + $0x50] ss:$12 sps:$4 sm:$0xff]   ;;  %v349_v45 = vunpack.c.h.bf16 %v310_v40 }
  0x63   :  { %2775 = vmatpush3.msra.mxu0 %v2408_v8  ;;  %393 = vmatpush1.msra.mxu1 %v372_v48  ;;  %v157_v9 = vsel %vm147_vm1, %v3440_v7, 0.0  ;;  %v353_v43 = vunpack.c.h.bf16 %v313_v39  ;;  %v309_v46 = vld [vmem:[#allocation5 + $0x38] ss:$12 sps:$4 sm:$0xff]   ;;  %v350_v48 = vunpack.c.l.bf16 %v313_v39  ;;  %vm999_vm2 = vcmask 64512  }
  0x64   :  { %2776 = vmatprep.subr.mxu0 %v3241_v0  ;;  %394 = vmatprep.subr.mxu1 %v370_v51  ;;  %v152_v2 = vadd.f32 %v151_v63, %v150_v62  ;;  %v344_v59 = vunpack.c.l.bf16 %v309_v46  ;;  %v302_v60 = vld [vmem:[#allocation5 + $0x18] sm:$0xff]  ;;  %vm2282_vm3 = vcmask 1041408   ;;  %vm2359_vm4 = vcmask 58368  }
  0x65   :  { %2777 = vmatpush3.msra.mxu0 %v2407_v10  ;;  %395 = vmatpush1.msra.mxu1 %v369_v53  ;;  %v304_v53 = vld [vmem:[#allocation5 + $0x24] sm:$0xff] }
  0x66   :  { %2778 = vmatprep.subr.mxu0 %v3241_v0  ;;  %396 = vmatprep.subr.mxu1 %v367_v54  ;;  %v154_v5 = vadd.f32 %v153_v3, %v152_v2  ;;  %v340_v62 = vunpack.c.h.bf16 %v304_v53  ;;  %v339_v63 = vunpack.c.l.bf16 %v304_v53  ;;  %v300_v3 = vld [vmem:[#allocation5 + $0xc] sm:$0xff] }
  0x67   :  { %2779 = vmatpush3.msra.mxu0 %v2404_v11  ;;  %397 = vmatpush1.msra.mxu1 %v366_v56 }
  0x68   :  { %2780 = vmatprep.subr.mxu0 %v3241_v0  ;;  %v156_v8 = vadd.f32 %v155_v6, %v154_v5  ;;  %v337_v5 = vunpack.c.h.bf16 %v302_v60  ;;  %v301_v6 = vld [vmem:[#allocation5 + $0x8] ss:$12 sps:$4 sm:$0xff]  }
  0x69   :  { %2781 = vmatpush3.msra.mxu0 %v2403_v13 }
  0x6a   :  { %2782 = vmatprep.subr.mxu0 %v3241_v0  ;;  %v158_v10 = vadd.f32 %v157_v9, %v156_v8  ;;  %v336_v8 = vunpack.c.l.bf16 %v302_v60 }
  0x6b   :  { %2783 = vmatpush3.msra.mxu0 %v2400_v14 }
  0x6c   :  { %2784 = vmatprep.subr.mxu0 %v3241_v0  ;;  %v279_v13 = vrot.slane %v158_v10, %v3397_v28  ;;  %v298_v10 = vld [vmem:[#allocation5] sm:$0xff] }
  0x6d   :  { %2785 = vmatpush3.msra.mxu0 %v2399_v16 }
  0x6e   :  { %2786 = vmatprep.subr.mxu0 %v3241_v0 }
  0x6f   :  { %2787 = vmatpush3.msra.mxu0 %v2396_v17  ;;  %v320_v17 = vld [vmem:[#allocation5 + $0x84] sm:$0xff] }
  0x70   :  { %2788 = vmatprep.subr.mxu0 %v3241_v0  ;;  %v364_v18 = vunpack.c.h.bf16 %v320_v17 }
  0x71   :  { %2789 = vmatpush3.msra.mxu0 %v2395_v19  ;;  %v321_v19 = vld [vmem:[#allocation5 + $0x80] ss:$12 sps:$4 sm:$0xff]  }
  0x72   :  { %2790 = vmatprep.subr.mxu0 %v3241_v0  ;;  %v365_v21 = vunpack.c.h.bf16 %v321_v19  ;;  %398 = vmatprep.subr.mxu1 %v364_v18 }
  0x73   :  { %2791 = vmatpush3.msra.mxu0 %v2392_v20  ;;  %v363_v20 = vunpack.c.l.bf16 %v320_v17  ;;  %v332_v17 = vunpack.c.l.bf16 %v301_v6 }
  0x74   :  { %2792 = vmatprep.subr.mxu0 %v3241_v0 }
  0x75   :  { %2793 = vmatpush3.msra.mxu0 %v2391_v22  ;;  %v318_v22 = vld [vmem:[#allocation5 + $0x78] sm:$0xff]  ;;  %399 = vmatpush1.msra.mxu1 %v363_v20 }
  0x76   :  { %2794 = vmatprep.subr.mxu0 %v3241_v0 }
  0x77   :  { %2795 = vmatpush3.msra.mxu0 %v2388_v23  ;;  %v361_v23 = vunpack.c.h.bf16 %v318_v22 }
  0x78   :  { %2796 = vmatprep.subr.mxu0 %v3241_v0 }
  0x79   :  { %2797 = vmatpush3.msra.mxu0 %v2387_v24  ;;  %v360_v24 = vunpack.c.l.bf16 %v318_v22  ;;  %400 = vmatprep.subr.mxu1 %v361_v23  ;;  %v295_v22 = vsub.s32 2, %v3394_v27 }
  0x7a   :  { %2799 = vmatmul.mubr.f32.vlgmr.msra.gmra.mxu0 %v159_v25  ;;  %2801 = vmatprep.subr.mxu0 %v3241_v0  ;;  %v362_v25 = vunpack.c.l.bf16 %v321_v19 }
  0x7b   :  { %2833 = vmatprep.mubr.msk.f32.mxu0 %vm3242_vm0, %v3241_v0  ;;  %2802 = vmatpush3.msra.mxu0 %v377_v44  ;;  %v308_v44 = vld [vmem:[#allocation5 + $0x3c] sm:$0xff] }
  0x7c   :  { %2803 = vmatprep.subr.mxu0 %v3241_v0  ;;  %401 = vmatpush1.msra.mxu1 %v360_v24  ;;  %v346_v50 = vunpack.c.h.bf16 %v308_v44  ;;  %v345_v51 = vunpack.c.l.bf16 %v308_v44 }
  0x7d   :  { %2804 = vmatpush3.msra.mxu0 %v374_v49  ;;  %v306_v49 = vld [vmem:[#allocation5 + $0x30] sm:$0xff] }
  0x7e   :  { %2805 = vmatprep.subr.mxu0 %v3241_v0  ;;  %v343_v54 = vunpack.c.h.bf16 %v306_v49  ;;  %v342_v56 = vunpack.c.l.bf16 %v306_v49 }
  0x7f   :  { %2806 = vmatpush3.msra.mxu0 %v371_v52  ;;  %v347_v52 = vunpack.c.h.bf16 %v309_v46 }
  0x80   :  { %2807 = vmatprep.subr.mxu0 %v3241_v0 }
  0x81   :  { %2808 = vmatpush3.msra.mxu0 %v368_v55  ;;  %v305_v55 = vld [vmem:[#allocation5 + $0x20] ss:$12 sps:$4 sm:$0xff]  }
  0x82   :  { %2809 = vmatprep.subr.mxu0 %v3241_v0  ;;  %v341_v2 = vunpack.c.h.bf16 %v305_v55  ;;  %v338_v9 = vunpack.c.l.bf16 %v305_v55 }
  0x83   :  { %2810 = vmatpush3.msra.mxu0 %v365_v21  ;;  %v290_v21 = vsub.s32 1, %v3394_v27 }
  0x84   :  { %2811 = vmatprep.subr.mxu0 %v3241_v0 }
  0x85   :  { %2812 = vmatpush3.msra.mxu0 %v362_v25  ;;  %v291_v23 = vrot.slane %v3399_v29, %v290_v21 }
  0x86   :  { %2813 = vmatprep.subr.mxu0 %v3241_v0 }
 0x13a   :  { %v262_v31 = vpop.f32.mrf.mxu0 }
 0x13b   :  { %v263_v32 = vadd.f32 %v262_v31, %v195_v30  ;;  %v358_v30 = vunpack.c.h.bf16 %v316_v26  ;;  %v317_v31 = vld [vmem:[#allocation5 + $0x68] ss:$12 sps:$4 sm:$0xff]  }
 0x13c   :  { %v2800_v33 = vpop.f32.mrf.mxu0 }
 0x13d   :  { %v266_v34 = vmul.f32 %v263_v32, %v263_v32  ;;  %v359_v33 = vunpack.c.h.bf16 %v317_v31  ;;  %402 = vmatprep.subr.mxu1 %v358_v30 }
 0x13f   :  { %267 = vadd.xlane.f32.xlu0 %v266_v34  ;;  %v314_v34 = vld [vmem:[#allocation5 + $0x60] sm:$0xff]  ;;  %2814 = vmatpush3.msra.mxu0 %v359_v33  ;;  %v380_v33 = vsub.s32 3, %v3394_v27 }
 0x140   :  { %2815 = vmatprep.subr.mxu0 %v3241_v0 }
 0x141   :  { %v381_v40 = vrot.slane %v3399_v29, %v380_v33 }
 0x1c8   :  { %v268_v35 = vpop.xlane.xlu0 %267 }
 0x1c9   :  { %v269_v36 = vmax.f32 %v268_v35, 1e-24  ;;  %v355_v35 = vunpack.c.h.bf16 %v314_v34 }
 0x1cb   :  { %3024 = vrsqrt.f32 %v269_v36  ;;  %v354_v36 = vunpack.c.l.bf16 %v314_v34 }
 0x1d8   :  { %v3025_v37 = vpop.eup %3024 }
 0x1d9   :  { %v271_v38 = vmul.f32 %v3025_v37, %v263_v32  ;;  %v357_v32 = vunpack.c.l.bf16 %v316_v26  ;;  %v356_v37 = vunpack.c.l.bf16 %v317_v31  ;;  %v296_v26 = vrot.slane %v3399_v29, %v295_v22 }
 0x1db   :  { %272 = vadd.xlane.f32.xlu0 %v271_v38  ;;  %403 = vmatpush1.msra.mxu1 %v357_v32  ;;  %v138_v32 = vld [vmem:[#allocation2 + $0x8] sm:$0xff] }
 0x1dc   :  { %404 = vmatprep.subr.mxu1 %v355_v35  ;;  %2816 = vmatpush3.msra.mxu0 %v356_v37  ;;  %v385_v34 = vrot.slane %v138_v32, %v380_v33 }
 0x1dd   :  { %405 = vmatpush1.msra.mxu1 %v354_v36  ;;  %2817 = vmatprep.subr.mxu0 %v3241_v0  ;;  %v3479_v36 = vrot.slane %v3410_v57, %v3397_v28  ;;  %v3491_v57 = vrot.slane %v3422_v61, %v3397_v28 }
 0x1de   :  { %2818 = vmatpush3.msra.mxu0 %v353_v43 }
 0x1df   :  { %2819 = vmatprep.subr.mxu0 %v3241_v0 }
 0x1e0   :  { %2820 = vmatpush3.msra.mxu0 %v350_v48 }
 0x1e1   :  { %2821 = vmatprep.subr.mxu0 %v3241_v0 }
 0x1e2   :  { %2822 = vmatpush3.msra.mxu0 %v347_v52 }
 0x1e3   :  { %2823 = vmatprep.subr.mxu0 %v3241_v0 }
 0x1e4   :  { %2824 = vmatpush3.msra.mxu0 %v344_v59 }
 0x1e5   :  { %2825 = vmatprep.subr.mxu0 %v3241_v0 }
 0x1e6   :  { %2826 = vmatpush3.msra.mxu0 %v341_v2 }
 0x1e7   :  { %2827 = vmatprep.subr.mxu0 %v3241_v0 }
 0x1e8   :  { %2828 = vmatpush3.msra.mxu0 %v338_v9 }
 0x1e9   :  { %2829 = vmatprep.subr.mxu0 %v3241_v0 }
 0x264   :  { %v273_v11 = vpop.xlane.xlu0 %272 }
 0x265   :  { %v274_v12 = vmul.f32 0.041666668, %v273_v11  ;;  %v334_v11 = vunpack.c.h.bf16 %v300_v3 }
 0x267   :  { %v275_v14 = vsub.f32 %v271_v38, %v274_v12  ;;  %v312_v38 = vld [vmem:[#allocation5 + $0x54] sm:$0xff]  ;;  %v333_v12 = vunpack.c.l.bf16 %v300_v3 }
 0x268   :  { %v352_v41 = vunpack.c.h.bf16 %v312_v38  ;;  %v351_v42 = vunpack.c.l.bf16 %v312_v38 }
 0x269   :  { %v3444_v15 = vmul.f32 %v279_v13, %v275_v14  ;;  %v335_v13 = vunpack.c.h.bf16 %v301_v6  ;;  %v331_v14 = vunpack.c.h.bf16 %v298_v10 }
 0x26a   :  { %406 = vmatprep.subr.mxu1 %v352_v41 }
 0x26b   :  { %v281_v16 = vmul.f32 %v3444_v15, %v3444_v15  ;;  %407 = vmatpush1.msra.mxu1 %v351_v42  ;;  %2830 = vmatpush3.msra.mxu0 %v335_v13  ;;  %v3485_v42 = vrot.slane %v3415_v58, %v3397_v28  ;;  %v3499_v58 = vrot.slane %v3428_v1, %v3397_v28 }
 0x26c   :  { %408 = vmatprep.subr.mxu1 %v349_v45  ;;  %2831 = vmatprep.subr.mxu0 %v3241_v0  ;;  %v3507_v45 = vrot.slane %v3434_v4, %v3397_v28  ;;  %v3514_v1 = vrot.slane %v3440_v7, %v3397_v28 }
 0x26d   :  { %282 = vadd.xlane.f32.xlu1 %v281_v16  ;;  %409 = vmatpush1.msra.mxu1 %v348_v47  ;;  %v330_v16 = vunpack.c.l.bf16 %v298_v10  ;;  %v139_v47 = vld [vmem:[#allocation2 + $0x10] sm:$0xff] }
 0x26e   :  { %410 = vmatprep.subr.mxu1 %v346_v50  ;;  %2832 = vmatpush3.msra.mxu0 %v332_v17  ;;  %v389_v4 = vrot.slane %v139_v47, %v380_v33 }
 0x26f   :  { %411 = vmatpush1.msra.mxu1 %v345_v51  ;;  %2896 = vmatprep.subr.mxu0 %v3241_v0 }
 0x270   :  { %412 = vmatprep.subr.mxu1 %v343_v54 }
 0x271   :  { %413 = vmatpush1.msra.mxu1 %v342_v56 }
 0x272   :  { %414 = vmatprep.subr.mxu1 %v340_v62 }
 0x273   :  { %415 = vmatpush1.msra.mxu1 %v339_v63 }
 0x274   :  { %416 = vmatprep.subr.mxu1 %v337_v5 }
 0x275   :  { %417 = vmatpush1.msra.mxu1 %v336_v8 }
 0x276   :  { %418 = vmatprep.subr.mxu1 %v334_v11 }
 0x277   :  { %419 = vmatpush1.msra.mxu1 %v333_v12 }
 0x278   :  { %420 = vmatprep.subr.mxu1 %v331_v14 }
 0x279   :  { %421 = vmatpush1.msra.mxu1 %v330_v16 }
 0x27a   :  { %2836 = vmatprep.subr.mxu1 %v3241_v0 }
 0x2f6   :  { %v283_v18 = vpop.xlane.xlu1 %282 }
 0x2f7   :  { %v284_v19 = vmul.f32 0.041666668, %v283_v18 }
 0x2f9   :  { %v285_v20 = vadd.f32 1e-05, %v284_v19 }
 0x2fb   :  { %3026 = vrsqrt.f32 %v285_v20 }
 0x308   :  { %v3027_v24 = vpop.eup %3026 }
 0x309   :  { %v287_v25 = vmul.f32 %v3027_v24, %v3444_v15 }
 0x30b   :  { %v292_v30 = vmul.f32 %v291_v23, %v287_v25 }
 0x30d   :  { %v3468_v31 = vadd.f32 %v296_v26, %v292_v30 }
 0x30f   :  { %455 = vmatmul.mubr.f32.vlgmr.msra.gmra.mxu1 %v3468_v31  ;;  %2834 = vmatmul.mubr.f32.vlgmr.msra.gmra.mxu0 %v3468_v31 }
 0x310   :  { %2838 = vmatprep.mubr.msk.f32.mxu1 %vm3242_vm0, %v3241_v0  ;;  %2928 = vmatprep.mubr.msk.f32.mxu0 %vm3242_vm0, %v3241_v0 }
 0x3cf   :  { %v456_v15 = vpop.f32.mrf.mxu1  ;;  %v527_v35 = vpop.f32.mrf.mxu0 }
 0x3d0   :  { %v457_v43 = vadd.f32 %v456_v15, %v381_v40  ;;  %v3524_v7 = vadd.f32 %v527_v35, %v389_v4 }
 0x3d1   :  { %v458_v37 = vpop.f32.mrf.mxu1  ;;  %v2835_v38 = vpop.f32.mrf.mxu0 }
 0x3d2   :  { %v459_v39 = vadd.f32 %v458_v37, %v385_v34 }
 0x3d4   :  { %v567_v41 = vmul.f32 %v3479_v36, %v459_v39  ;;  %v568_v44 = vmul.f32 %v3485_v42, %v459_v39  ;;  %v569_v29 = vmul.f32 %v3491_v57, %v459_v39  ;;  %v570_v61 = vmul.f32 %v3499_v58, %v459_v39 }
 0x3d5   :  { %v571_v46 = vmul.f32 %v3507_v45, %v459_v39  ;;  %v572_v48 = vmul.f32 %v3514_v1, %v459_v39 }
 0x3d6   :  { %2837 = vmatpush3.xpose.msra.mxu1 %v567_v41 }
 0x3d7   :  { %2841 = vmatprep.subr.mxu1 %v3241_v0 }
 0x3d9   :  { %2839 = vmatmul.mubr.f32.vlgmr.msra.gmra.mxu1 %v457_v43 }
 0x3da   :  { %2842 = vmatpush3.xpose.msra.mxu1 %v568_v44  ;;  %2843 = vmatprep.mubr.msk.f32.mxu1 %vm3242_vm0, %v3241_v0 }
 0x3db   :  { %2846 = vmatprep.subr.mxu1 %v3241_v0 }
 0x3dd   :  { %2844 = vmatmul.mubr.f32.vlgmr.msra.gmra.mxu1 %v457_v43 }
 0x3de   :  { %2847 = vmatpush3.xpose.msra.mxu1 %v569_v29  ;;  %2848 = vmatprep.mubr.msk.f32.mxu1 %vm3242_vm0, %v3241_v0 }
 0x3df   :  { %2851 = vmatprep.subr.mxu1 %v3241_v0 }
 0x3e1   :  { %2849 = vmatmul.mubr.f32.vlgmr.msra.gmra.mxu1 %v457_v43 }
 0x3e2   :  { %2852 = vmatpush3.xpose.msra.mxu1 %v570_v61  ;;  %2853 = vmatprep.mubr.msk.f32.mxu1 %vm3242_vm0, %v3241_v0 }
 0x3e3   :  { %2856 = vmatprep.subr.mxu1 %v3241_v0 }
 0x3e5   :  { %2854 = vmatmul.mubr.f32.vlgmr.msra.gmra.mxu1 %v457_v43 }
 0x3e6   :  { %2857 = vmatpush3.xpose.msra.mxu1 %v571_v46  ;;  %2858 = vmatprep.mubr.msk.f32.mxu1 %vm3242_vm0, %v3241_v0 }
 0x3e7   :  { %2861 = vmatprep.subr.mxu1 %v3241_v0 }
 0x3e9   :  { %2859 = vmatmul.mubr.f32.vlgmr.msra.gmra.mxu1 %v457_v43 }
 0x3ea   :  { %2862 = vmatpush3.xpose.msra.mxu1 %v572_v48  ;;  %2863 = vmatprep.mubr.msk.f32.mxu1 %vm3242_vm0, %v3241_v0 }
 0x3eb   :  { %2866 = vmatprep.subr.mxu1 %v3241_v0 }
 0x3ed   :  { %2864 = vmatmul.mubr.f32.vlgmr.msra.gmra.mxu1 %v457_v43 }
 0x3ee   :  { %2867 = vmatpush3.msra.mxu1 %v3524_v7  ;;  %2868 = vmatprep.mubr.msk.f32.mxu1 %vm3242_vm0, %v3241_v0 }
 0x3ef   :  { %2871 = vmatprep.subr.mxu1 %v3241_v0 }
 0x499   :  { %v639_v49 = vpop.f32.mrf.mxu1 }
 0x49a   :  { %v993_v50 = vmul.f32 0.5, %v639_v49 }
 0x49b   :  { %v2840_v51 = vpop.f32.mrf.mxu1 }
 0x49c   :  { %v1000_v52 = vsel %vm999_vm2, %v993_v50, -inf  ;;  %v2590_v51 = vld [vmem:[%s3678_s6 + $0x38] sm:$0xff]  }
 0x49d   :  { %1001 = vmax.xlane.f32.xlu1 %v1000_v52  ;;  %v709_v53 = vpop.f32.mrf.mxu1  ;;  %v2589_v52 = vld [vmem:[%s3678_s6 + $0x30] sm:$0xff]  }
 0x49e   :  { %v994_v54 = vmul.f32 0.5, %v709_v53  ;;  %v2448_v53 = vunpack.c.h.bf16 %v2590_v51 }
 0x49f   :  { %v2845_v55 = vpop.f32.mrf.mxu1 }
 0x4a0   :  { %v1003_v56 = vsel %vm999_vm2, %v994_v54, -inf  ;;  %2897 = vmatpush3.msra.mxu0 %v2448_v53  ;;  %v2444_v55 = vunpack.c.h.bf16 %v2589_v52  ;;  %v1632_v53 = vld [vmem:[#allocation7 + $0x50] sm:$0xff] }
 0x4a1   :  { %1004 = vmax.xlane.f32.xlu0 %v1003_v56  ;;  %v779_v59 = vpop.f32.mrf.mxu1  ;;  %2898 = vmatprep.subr.mxu0 %v3241_v0 }
 0x4a2   :  { %v995_v60 = vmul.f32 0.5, %v779_v59 }
 0x4a3   :  { %v2850_v62 = vpop.f32.mrf.mxu1 }
 0x4a4   :  { %v1006_v63 = vsel %vm999_vm2, %v995_v60, -inf }
 0x4a5   :  { %1007 = vmax.xlane.f32.xlu1 %v1006_v63  ;;  %v849_v2 = vpop.f32.mrf.mxu1 }
 0x4a6   :  { %v996_v3 = vmul.f32 0.5, %v849_v2 }
 0x4a7   :  { %v2855_v5 = vpop.f32.mrf.mxu1 }
 0x4a8   :  { %v1009_v6 = vsel %vm999_vm2, %v996_v3, -inf }
 0x4a9   :  { %1010 = vmax.xlane.f32.xlu0 %v1009_v6  ;;  %v919_v8 = vpop.f32.mrf.mxu1 }
 0x4aa   :  { %v997_v9 = vmul.f32 0.5, %v919_v8 }
 0x4ab   :  { %v2860_v10 = vpop.f32.mrf.mxu1 }
 0x4ac   :  { %v1012_v11 = vsel %vm999_vm2, %v997_v9, -inf }
 0x4ad   :  { %1013 = vmax.xlane.f32.xlu1 %v1012_v11  ;;  %v989_v12 = vpop.f32.mrf.mxu1 }
 0x4ae   :  { %v998_v13 = vmul.f32 0.5, %v989_v12 }
 0x4af   :  { %v2865_v14 = vpop.f32.mrf.mxu1 }
 0x4b0   :  { %v1015_v16 = vsel %vm999_vm2, %v998_v13, -inf }
 0x4b1   :  { %1016 = vmax.xlane.f32.xlu0 %v1015_v16 }
 0x526   :  { %v1002_v17 = vpop.xlane.xlu1 %1001 }
 0x527   :  { %v1018_v18 = vsub.f32 %v993_v50, %v1002_v17 }
 0x529   :  { %v1024_v19 = vmul.f32 1.442695, %v1018_v18  ;;  %v2443_v18 = vunpack.c.l.bf16 %v2589_v52 }
 0x52a   :  { %v1005_v20 = vpop.xlane.xlu0 %1004 }
 0x52b   :  { %3028 = vpow2.f32 %v1024_v19  ;;  %v1019_v22 = vsub.f32 %v994_v54, %v1005_v20  ;;  %v2447_v54 = vunpack.c.l.bf16 %v2590_v51  ;;  %v2588_v19 = vld [vmem:[%s3678_s6 + $0x28] sm:$0xff]  }
 0x52c   :  { %v2440_v20 = vunpack.c.h.bf16 %v2588_v19 }
 0x52d   :  { %v1026_v23 = vmul.f32 1.442695, %v1019_v22  ;;  %2899 = vmatpush3.msra.mxu0 %v2447_v54  ;;  %v2439_v22 = vunpack.c.l.bf16 %v2588_v19 }
 0x52e   :  { %v1008_v24 = vpop.xlane.xlu1 %1007  ;;  %2900 = vmatprep.subr.mxu0 %v3241_v0 }
 0x52f   :  { %3030 = vpow2.f32 %v1026_v23  ;;  %v1020_v25 = vsub.f32 %v995_v60, %v1008_v24  ;;  %2901 = vmatpush3.msra.mxu0 %v2444_v55 }
 0x530   :  { %2902 = vmatprep.subr.mxu0 %v3241_v0 }
 0x531   :  { %v1028_v26 = vmul.f32 1.442695, %v1020_v25  ;;  %2903 = vmatpush3.msra.mxu0 %v2443_v18  ;;  %v2586_v25 = vld [vmem:[%s3678_s6 + $0x18] sm:$0xff]   ;;  %v1625_v18 = vld [vmem:[#allocation7 + $0x18] sm:$0xff] }
 0x532   :  { %v1011_v30 = vpop.xlane.xlu0 %1010  ;;  %2904 = vmatprep.subr.mxu0 %v3241_v0 }
 0x533   :  { %3032 = vpow2.f32 %v1028_v26  ;;  %v1021_v32 = vsub.f32 %v996_v3, %v1011_v30  ;;  %2905 = vmatpush3.msra.mxu0 %v2440_v20  ;;  %v2432_v26 = vunpack.c.h.bf16 %v2586_v25  ;;  %v2431_v30 = vunpack.c.l.bf16 %v2586_v25 }
 0x534   :  { %2906 = vmatprep.subr.mxu0 %v3241_v0 }
 0x535   :  { %v1030_v33 = vmul.f32 1.442695, %v1021_v32  ;;  %2907 = vmatpush3.msra.mxu0 %v2439_v22  ;;  %v2585_v32 = vld [vmem:[%s3678_s6 + $0x10] sm:$0xff]   ;;  %v1624_v22 = vld [vmem:[#allocation7 + $0x10] sm:$0xff] }
 0x536   :  { %v1014_v34 = vpop.xlane.xlu1 %1013  ;;  %2908 = vmatprep.subr.mxu0 %v3241_v0  ;;  %v1642_v25 = vunpack.c.l.bf16 %v1624_v22 }
 0x537   :  { %3034 = vpow2.f32 %v1030_v33  ;;  %v1022_v15 = vsub.f32 %v997_v9, %v1014_v34  ;;  %v2428_v33 = vunpack.c.h.bf16 %v2585_v32  ;;  %v2427_v34 = vunpack.c.l.bf16 %v2585_v32 }
 0x538   :  { %v3029_v35 = vpop.eup %3028 }
 0x539   :  { %v1032_v37 = vmul.f32 1.442695, %v1022_v15  ;;  %v1036_v38 = vsel %vm999_vm2, %v3029_v35, 0.0  ;;  %v2584_v15 = vld [vmem:[%s3678_s6 + $0x8] sm:$0xff]  }
 0x53a   :  { %1037 = vadd.xlane.f32.xlu1 %v1036_v38  ;;  %v1017_v39 = vpop.xlane.xlu0 %1016  ;;  %v2418_v38 = vld [vmem:[%s3678_s6] sm:$0xff]  }
 0x53b   :  { %3036 = vpow2.f32 %v1032_v37  ;;  %v1023_v40 = vsub.f32 %v998_v13, %v1017_v39  ;;  %v2423_v37 = vunpack.c.l.bf16 %v2584_v15  ;;  %v2420_v39 = vunpack.c.h.bf16 %v2418_v38 }
 0x53c   :  { %v3031_v41 = vpop.eup %3030 }
 0x53d   :  { %v1034_v43 = vmul.f32 1.442695, %v1023_v40  ;;  %v1039_v44 = vsel %vm999_vm2, %v3031_v41, 0.0  ;;  %v2419_v40 = vunpack.c.l.bf16 %v2418_v38 }
 0x53e   :  { %1040 = vadd.xlane.f32.xlu0 %v1039_v44  ;;  %v1635_v44 = vld [vmem:[#allocation7 + $0x68] sm:$0xff] }
 0x53f   :  { %3038 = vpow2.f32 %v1034_v43  ;;  %v1636_v43 = vld [vmem:[#allocation7 + $0x70] sm:$0xff] }
 0x540   :  { %v3033_v29 = vpop.eup %3032 }
 0x541   :  { %v1042_v61 = vsel %vm999_vm2, %v3033_v29, 0.0 }
 0x542   :  { %1043 = vadd.xlane.f32.xlu1 %v1042_v61 }
 0x544   :  { %v3035_v46 = vpop.eup %3034 }
 0x545   :  { %v1045_v47 = vsel %vm999_vm2, %v3035_v46, 0.0 }
 0x546   :  { %1046 = vadd.xlane.f32.xlu0 %v1045_v47  ;;  %v1666_v47 = vunpack.c.l.bf16 %v1636_v43 }
 0x548   :  { %v3037_v4 = vpop.eup %3036 }
 0x549   :  { %v1048_v48 = vsel %vm999_vm2, %v3037_v4, 0.0 }
 0x54a   :  { %1049 = vadd.xlane.f32.xlu1 %v1048_v48  ;;  %v1665_v48 = vunpack.c.h.bf16 %v1635_v44 }
 0x54c   :  { %v3039_v49 = vpop.eup %3038 }
 0x54d   :  { %v1051_v50 = vsel %vm999_vm2, %v3039_v49, 0.0 }
 0x54e   :  { %1052 = vadd.xlane.f32.xlu0 %v1051_v50  ;;  %v1633_v50 = vld [vmem:[#allocation7 + $0x58] sm:$0xff] }
 0x54f   :  { %v1661_v54 = vunpack.c.h.bf16 %v1633_v50  ;;  %v1660_v55 = vunpack.c.l.bf16 %v1633_v50 }
 0x5c3   :  { %v1038_v56 = vpop.xlane.xlu1 %1037 }
 0x5c4   :  { %3040 = vrcp.f32 %v1038_v56  ;;  %v1631_v56 = vld [vmem:[#allocation7 + $0x48] sm:$0xff] }
 0x5c7   :  { %v1041_v59 = vpop.xlane.xlu0 %1040 }
 0x5c8   :  { %3042 = vrcp.f32 %v1041_v59  ;;  %v1659_v59 = vunpack.c.h.bf16 %v1632_v53 }
 0x5cb   :  { %v1044_v60 = vpop.xlane.xlu1 %1043 }
 0x5cc   :  { %3044 = vrcp.f32 %v1044_v60  ;;  %v1658_v60 = vunpack.c.l.bf16 %v1632_v53 }
 0x5cf   :  { %v1047_v62 = vpop.xlane.xlu0 %1046 }
 0x5d0   :  { %3046 = vrcp.f32 %v1047_v62  ;;  %v1630_v62 = vld [vmem:[#allocation7 + $0x40] sm:$0xff] }
 0x5d1   :  { %v3041_v63 = vpop.eup %3040 }
 0x5d2   :  { %v1060_v2 = vmul.f32 %v3041_v63, %v3029_v35  ;;  %v2424_v35 = vunpack.c.h.bf16 %v2584_v15  ;;  %v1657_v63 = vunpack.c.h.bf16 %v1631_v56 }
 0x5d3   :  { %v1050_v3 = vpop.xlane.xlu1 %1049 }
 0x5d4   :  { %3048 = vrcp.f32 %v1050_v3  ;;  %2869 = vmatmul.mubr.msk.f32.vlgmr.msra.gmra.mxu1 %vm999_vm2, %v1060_v2  ;;  %v1656_v2 = vunpack.c.l.bf16 %v1631_v56  ;;  %v1629_v3 = vld [vmem:[#allocation7 + $0x38] sm:$0xff] }
 0x5d5   :  { %v3043_v5 = vpop.eup %3042  ;;  %2872 = vmatpush3.msra.mxu1 %v3524_v7  ;;  %2873 = vmatprep.mubr.msk.f32.mxu1 %vm3242_vm0, %v3241_v0 }
 0x5d6   :  { %2876 = vmatprep.subr.mxu1 %v3241_v0  ;;  %v1061_v6 = vmul.f32 %v3043_v5, %v3031_v41  ;;  %v1637_v41 = vld [vmem:[#allocation7 + $0x78] sm:$0xff]  ;;  %v1655_v5 = vunpack.c.h.bf16 %v1630_v62 }
 0x5d7   :  { %v1053_v8 = vpop.xlane.xlu0 %1052  ;;  %v1669_v61 = vunpack.c.h.bf16 %v1637_v41 }
 0x5d8   :  { %3050 = vrcp.f32 %v1053_v8  ;;  %2874 = vmatmul.mubr.msk.f32.vlgmr.msra.gmra.mxu1 %vm999_vm2, %v1061_v6  ;;  %v1654_v6 = vunpack.c.l.bf16 %v1630_v62  ;;  %v1628_v8 = vld [vmem:[#allocation7 + $0x30] sm:$0xff]  ;;  %v1763_v62 = vld [vmem:[#allocation8 + $0x60] sm:$0xff] }
 0x5d9   :  { %v3045_v9 = vpop.eup %3044  ;;  %2877 = vmatpush3.msra.mxu1 %v3524_v7  ;;  %2878 = vmatprep.mubr.msk.f32.mxu1 %vm3242_vm0, %v3241_v0 }
 0x5da   :  { %2881 = vmatprep.subr.mxu1 %v3241_v0  ;;  %v1062_v10 = vmul.f32 %v3045_v9, %v3033_v29  ;;  %v1668_v29 = vunpack.c.l.bf16 %v1637_v41  ;;  %v1653_v9 = vunpack.c.h.bf16 %v1629_v3 }
 0x5dc   :  { %2879 = vmatmul.mubr.msk.f32.vlgmr.msra.gmra.mxu1 %vm999_vm2, %v1062_v10  ;;  %v1652_v10 = vunpack.c.l.bf16 %v1629_v3  ;;  %v1762_v3 = vld [vmem:[#allocation8 + $0x58] sm:$0xff] }
 0x5dd   :  { %v3047_v11 = vpop.eup %3046  ;;  %2882 = vmatpush3.msra.mxu1 %v3524_v7  ;;  %2883 = vmatprep.mubr.msk.f32.mxu1 %vm3242_vm0, %v3241_v0 }
 0x5de   :  { %2886 = vmatprep.subr.mxu1 %v3241_v0  ;;  %v1063_v12 = vmul.f32 %v3047_v11, %v3035_v46  ;;  %v1667_v46 = vunpack.c.h.bf16 %v1636_v43  ;;  %v1627_v11 = vld [vmem:[#allocation7 + $0x28] sm:$0xff] }
 0x5e0   :  { %2884 = vmatmul.mubr.msk.f32.vlgmr.msra.gmra.mxu1 %vm999_vm2, %v1063_v12  ;;  %v1651_v12 = vunpack.c.h.bf16 %v1628_v8 }
 0x5e1   :  { %v3049_v13 = vpop.eup %3048  ;;  %2887 = vmatpush3.msra.mxu1 %v3524_v7  ;;  %2888 = vmatprep.mubr.msk.f32.mxu1 %vm3242_vm0, %v3241_v0 }
 0x5e2   :  { %2891 = vmatprep.subr.mxu1 %v3241_v0  ;;  %v1064_v14 = vmul.f32 %v3049_v13, %v3037_v4  ;;  %v1634_v4 = vld [vmem:[#allocation7 + $0x60] sm:$0xff]  ;;  %v1650_v13 = vunpack.c.l.bf16 %v1628_v8  ;;  %v1761_v8 = vld [vmem:[#allocation8 + $0x50] sm:$0xff] }
 0x5e3   :  { %v1663_v51 = vunpack.c.h.bf16 %v1634_v4  ;;  %v1662_v52 = vunpack.c.l.bf16 %v1634_v4 }
 0x5e4   :  { %2889 = vmatmul.mubr.msk.f32.vlgmr.msra.gmra.mxu1 %vm999_vm2, %v1064_v14  ;;  %v1626_v14 = vld [vmem:[#allocation7 + $0x20] sm:$0xff] }
 0x5e5   :  { %v3051_v16 = vpop.eup %3050  ;;  %2892 = vmatpush3.msra.mxu1 %v3524_v7  ;;  %2893 = vmatprep.mubr.msk.f32.mxu1 %vm3242_vm0, %v3241_v0  ;;  %v2587_v7 = vld [vmem:[%s3678_s6 + $0x20] sm:$0xff]   ;;  %v1647_v19 = vunpack.c.h.bf16 %v1626_v14  ;;  %v1646_v20 = vunpack.c.l.bf16 %v1626_v14  ;;  %v1759_v14 = vld [vmem:[#allocation8 + $0x40] sm:$0xff] }
 0x5e6   :  { %v1065_v17 = vmul.f32 %v3051_v16, %v3039_v49  ;;  %v2436_v23 = vunpack.c.h.bf16 %v2587_v7  ;;  %v2435_v24 = vunpack.c.l.bf16 %v2587_v7  ;;  %1678 = vmatprep.subr.mxu1 %v1669_v61  ;;  %v1664_v49 = vunpack.c.l.bf16 %v1635_v44 }
 0x5e7   :  { %v1649_v16 = vunpack.c.h.bf16 %v1627_v11  ;;  %v1645_v7 = vunpack.c.h.bf16 %v1625_v18 }
 0x5e8   :  { %2894 = vmatmul.mubr.msk.f32.vlgmr.msra.gmra.mxu1 %vm999_vm2, %v1065_v17  ;;  %2909 = vmatpush3.msra.mxu0 %v2436_v23  ;;  %v1648_v17 = vunpack.c.l.bf16 %v1627_v11  ;;  %v1644_v23 = vunpack.c.l.bf16 %v1625_v18  ;;  %v1760_v11 = vld [vmem:[#allocation8 + $0x48] sm:$0xff]  ;;  %v1758_v18 = vld [vmem:[#allocation8 + $0x38] sm:$0xff] }
 0x5e9   :  { %1742 = vmatprep.mubr.f32.mxu1 %v3241_v0  ;;  %2910 = vmatprep.subr.mxu0 %v3241_v0 }
 0x5ea   :  { %2911 = vmatpush3.msra.mxu0 %v2435_v24  ;;  %1679 = vmatpush1.msra.mxu1 %v1668_v29  ;;  %v1643_v24 = vunpack.c.h.bf16 %v1624_v22  ;;  %v1757_v22 = vld [vmem:[#allocation8 + $0x30] sm:$0xff] }
 0x5eb   :  { %2912 = vmatprep.subr.mxu0 %v3241_v0  ;;  %1680 = vmatprep.subr.mxu1 %v1667_v46 }
 0x5ec   :  { %2913 = vmatpush3.msra.mxu0 %v2432_v26  ;;  %1681 = vmatpush1.msra.mxu1 %v1666_v47 }
 0x5ed   :  { %2914 = vmatprep.subr.mxu0 %v3241_v0  ;;  %1682 = vmatprep.subr.mxu1 %v1665_v48 }
 0x5ee   :  { %2915 = vmatpush3.msra.mxu0 %v2431_v30  ;;  %1683 = vmatpush1.msra.mxu1 %v1664_v49 }
 0x5ef   :  { %2916 = vmatprep.subr.mxu0 %v3241_v0  ;;  %1684 = vmatprep.subr.mxu1 %v1663_v51 }
 0x5f0   :  { %2917 = vmatpush3.msra.mxu0 %v2428_v33  ;;  %1685 = vmatpush1.msra.mxu1 %v1662_v52  ;;  %v1622_v52 = vld [vmem:[#allocation7] sm:$0xff] }
 0x5f1   :  { %2918 = vmatprep.subr.mxu0 %v3241_v0  ;;  %1686 = vmatprep.subr.mxu1 %v1661_v54  ;;  %v1639_v53 = vunpack.c.h.bf16 %v1622_v52  ;;  %v1765_v54 = vld [vmem:[#allocation8 + $0x70] sm:$0xff] }
 0x5f2   :  { %2919 = vmatpush3.msra.mxu0 %v2427_v34  ;;  %1687 = vmatpush1.msra.mxu1 %v1660_v55  ;;  %v1764_v55 = vld [vmem:[#allocation8 + $0x68] sm:$0xff] }
 0x5f3   :  { %2920 = vmatprep.subr.mxu0 %v3241_v0  ;;  %1688 = vmatprep.subr.mxu1 %v1659_v59 }
 0x5f4   :  { %2921 = vmatpush3.msra.mxu0 %v2424_v35  ;;  %1689 = vmatpush1.msra.mxu1 %v1658_v60  ;;  %v1812_v60 = vunpack.c.h.bf16 %v1765_v54 }
 0x5f5   :  { %2922 = vmatprep.subr.mxu0 %v3241_v0  ;;  %1690 = vmatprep.subr.mxu1 %v1657_v63  ;;  %v1810_v63 = vunpack.c.h.bf16 %v1764_v55 }
 0x5f6   :  { %2923 = vmatpush3.msra.mxu0 %v2423_v37  ;;  %1691 = vmatpush1.msra.mxu1 %v1656_v2  ;;  %v1809_v2 = vunpack.c.l.bf16 %v1764_v55  ;;  %v1777_v55 = vld [vmem:[#allocation8 + $0xd0] sm:$0xff] }
 0x5f7   :  { %2924 = vmatprep.subr.mxu0 %v3241_v0  ;;  %1692 = vmatprep.subr.mxu1 %v1655_v5  ;;  %v1808_v5 = vunpack.c.h.bf16 %v1763_v62 }
 0x5f8   :  { %2925 = vmatpush3.msra.mxu0 %v2420_v39  ;;  %1693 = vmatpush1.msra.mxu1 %v1654_v6  ;;  %v1807_v6 = vunpack.c.l.bf16 %v1763_v62  ;;  %v1835_v62 = vunpack.c.l.bf16 %v1777_v55 }
 0x5f9   :  { %2926 = vmatprep.subr.mxu0 %v3241_v0  ;;  %1694 = vmatprep.subr.mxu1 %v1653_v9  ;;  %v1806_v9 = vunpack.c.h.bf16 %v1762_v3 }
 0x5fa   :  { %2927 = vmatpush3.msra.mxu0 %v2419_v40  ;;  %1695 = vmatpush1.msra.mxu1 %v1652_v10  ;;  %v1805_v10 = vunpack.c.l.bf16 %v1762_v3 }
 0x5fb   :  { %1696 = vmatprep.subr.mxu1 %v1651_v12  ;;  %v1804_v12 = vunpack.c.h.bf16 %v1761_v8 }
 0x5fc   :  { %1697 = vmatpush1.msra.mxu1 %v1650_v13  ;;  %v1803_v13 = vunpack.c.l.bf16 %v1761_v8 }
 0x5fd   :  { %1698 = vmatprep.subr.mxu1 %v1649_v16  ;;  %v1802_v16 = vunpack.c.h.bf16 %v1760_v11 }
 0x5fe   :  { %1699 = vmatpush1.msra.mxu1 %v1648_v17  ;;  %v1801_v17 = vunpack.c.l.bf16 %v1760_v11 }
 0x5ff   :  { %1700 = vmatprep.subr.mxu1 %v1647_v19  ;;  %v1800_v19 = vunpack.c.h.bf16 %v1759_v14 }
 0x600   :  { %1701 = vmatpush1.msra.mxu1 %v1646_v20  ;;  %v1799_v20 = vunpack.c.l.bf16 %v1759_v14 }
 0x601   :  { %1702 = vmatprep.subr.mxu1 %v1645_v7  ;;  %v1798_v7 = vunpack.c.h.bf16 %v1758_v18 }
 0x602   :  { %1703 = vmatpush1.msra.mxu1 %v1644_v23  ;;  %v1797_v23 = vunpack.c.l.bf16 %v1758_v18 }
 0x603   :  { %1704 = vmatprep.subr.mxu1 %v1643_v24  ;;  %v1756_v24 = vld [vmem:[#allocation8 + $0x28] sm:$0xff] }
 0x604   :  { %1705 = vmatpush1.msra.mxu1 %v1642_v25  ;;  %v1796_v25 = vunpack.c.h.bf16 %v1757_v22 }
 0x694   :  { %v1135_v26 = vpop.f32.mrf.mxu1 }
 0x695   :  { %v1504_v38 = vmul.f32 %v1135_v26, %v3479_v36  ;;  %v1623_v36 = vld [vmem:[#allocation7 + $0x8] sm:$0xff]  ;;  %v1795_v26 = vunpack.c.l.bf16 %v1757_v22  ;;  %v1549_v22 = vsub.s32 4, %v3394_v27 }
 0x696   :  { %v2870_v30 = vpop.f32.mrf.mxu1  ;;  %v1641_v51 = vunpack.c.h.bf16 %v1623_v36 }
 0x697   :  { %v1755_v30 = vld [vmem:[#allocation8 + $0x20] sm:$0xff] }
 0x698   :  { %v1208_v32 = vpop.f32.mrf.mxu1  ;;  %1706 = vmatprep.subr.mxu1 %v1641_v51 }
 0x699   :  { %v1505_v35 = vmul.f32 %v1208_v32, %v3485_v42  ;;  %v1794_v32 = vunpack.c.h.bf16 %v1756_v24 }
 0x69a   :  { %v2875_v33 = vpop.f32.mrf.mxu1 }
 0x69b   :  { %v1510_v41 = vadd.f32 %v1505_v35, %v1504_v38  ;;  %v1793_v33 = vunpack.c.l.bf16 %v1756_v24  ;;  %v1791_v35 = vunpack.c.l.bf16 %v1755_v30 }
 0x69c   :  { %v1281_v34 = vpop.f32.mrf.mxu1 }
 0x69d   :  { %v1506_v39 = vmul.f32 %v1281_v34, %v3491_v57  ;;  %v1640_v57 = vunpack.c.l.bf16 %v1623_v36  ;;  %v1754_v34 = vld [vmem:[#allocation8 + $0x18] sm:$0xff] }
 0x69e   :  { %v2880_v15 = vpop.f32.mrf.mxu1  ;;  %v1790_v38 = vunpack.c.h.bf16 %v1754_v34 }
 0x69f   :  { %v1511_v29 = vadd.f32 %v1510_v41, %v1506_v39  ;;  %1707 = vmatpush1.msra.mxu1 %v1640_v57  ;;  %v1792_v15 = vunpack.c.h.bf16 %v1755_v30  ;;  %v1789_v39 = vunpack.c.l.bf16 %v1754_v34  ;;  %v1779_v57 = vld [vmem:[#allocation8 + $0xe0] sm:$0xff] }
 0x6a0   :  { %v1354_v37 = vpop.f32.mrf.mxu1  ;;  %1708 = vmatprep.subr.mxu1 %v1639_v53 }
 0x6a1   :  { %v1507_v43 = vmul.f32 %v1354_v37, %v3499_v58  ;;  %v1638_v58 = vunpack.c.l.bf16 %v1622_v52  ;;  %v1753_v37 = vld [vmem:[#allocation8 + $0x10] sm:$0xff] }
 0x6a2   :  { %v2885_v40 = vpop.f32.mrf.mxu1  ;;  %v1788_v41 = vunpack.c.h.bf16 %v1753_v37 }
 0x6a3   :  { %v1512_v47 = vadd.f32 %v1511_v29, %v1507_v43  ;;  %1709 = vmatpush1.msra.mxu1 %v1638_v58  ;;  %v1752_v40 = vld [vmem:[#allocation8 + $0x8] sm:$0xff]  ;;  %v1787_v43 = vunpack.c.l.bf16 %v1753_v37  ;;  %v1778_v58 = vld [vmem:[#allocation8 + $0xd8] sm:$0xff] }
 0x6a4   :  { %v1427_v44 = vpop.f32.mrf.mxu1  ;;  %v1786_v29 = vunpack.c.h.bf16 %v1752_v40 }
 0x6a5   :  { %v1508_v61 = vmul.f32 %v1427_v44, %v3507_v45  ;;  %v1766_v45 = vld [vmem:[#allocation8 + $0x78] sm:$0xff]  ;;  %v1751_v44 = vld [vmem:[#allocation8] sm:$0xff] }
 0x6a6   :  { %v2890_v46 = vpop.f32.mrf.mxu1  ;;  %v1813_v56 = vunpack.c.l.bf16 %v1766_v45  ;;  %v1814_v59 = vunpack.c.h.bf16 %v1766_v45  ;;  %v1840_v45 = vunpack.c.h.bf16 %v1779_v57 }
 0x6a7   :  { %v1513_v48 = vadd.f32 %v1512_v47, %v1508_v61  ;;  %v1785_v61 = vunpack.c.l.bf16 %v1752_v40  ;;  %v1782_v46 = vld [vmem:[#allocation8 + $0xf8] sm:$0xff]  ;;  %v1784_v47 = vunpack.c.h.bf16 %v1751_v44 }
 0x6a8   :  { %v1500_v4 = vpop.f32.mrf.mxu1  ;;  %1855 = vmatprep.subr.mxu0 %v1814_v59  ;;  %v1837_v59 = vunpack.c.l.bf16 %v1778_v58 }
 0x6a9   :  { %v1509_v49 = vmul.f32 %v1500_v4, %v3514_v1  ;;  %v1811_v1 = vunpack.c.l.bf16 %v1765_v54  ;;  %v1783_v4 = vunpack.c.l.bf16 %v1751_v44  ;;  %v1839_v54 = vunpack.c.l.bf16 %v1779_v57  ;;  %v2595_v57 = vld [vmem:[#allocation10 + $0x28] sm:$0xff]  }
 0x6aa   :  { %v2895_v42 = vpop.f32.mrf.mxu1 }
 0x6ab   :  { %v1514_v50 = vadd.f32 %v1513_v48, %v1509_v49  ;;  %v1781_v48 = vld [vmem:[#allocation8 + $0xf0] sm:$0xff]  ;;  %v1846_v49 = vunpack.c.h.bf16 %v1782_v46  ;;  %v1845_v42 = vunpack.c.l.bf16 %v1782_v46 }
 0x6ac   :  { %v1844_v36 = vunpack.c.h.bf16 %v1781_v48  ;;  %v1843_v51 = vunpack.c.l.bf16 %v1781_v48  ;;  %v2596_v48 = vld [vmem:[#allocation10 + $0x30] sm:$0xff]  }
 0x6ad   :  { %2929 = vmatmul.mubr.f32.vlgmr.msra.gmra.mxu0 %v1514_v50  ;;  %v1780_v50 = vld [vmem:[#allocation8 + $0xe8] sm:$0xff] }
 0x6ae   :  { %1856 = vmatpush1.msra.mxu0 %v1813_v56  ;;  %v1842_v52 = vunpack.c.h.bf16 %v1780_v50  ;;  %v1841_v53 = vunpack.c.l.bf16 %v1780_v50  ;;  %v1838_v56 = vunpack.c.h.bf16 %v1778_v58  ;;  %v2476_v50 = vunpack.c.h.bf16 %v2596_v48 }
 0x6af   :  { %1857 = vmatprep.subr.mxu0 %v1812_v60  ;;  %v1776_v60 = vld [vmem:[#allocation8 + $0xc8] sm:$0xff]  ;;  %v2472_v58 = vunpack.c.h.bf16 %v2595_v57 }
 0x6b0   :  { %1858 = vmatpush1.msra.mxu0 %v1811_v1  ;;  %v1836_v1 = vunpack.c.h.bf16 %v1777_v55  ;;  %v1833_v3 = vunpack.c.l.bf16 %v1776_v60  ;;  %v2594_v55 = vld [vmem:[#allocation10 + $0x20] sm:$0xff]  }
 0x6b1   :  { %1859 = vmatprep.subr.mxu0 %v1810_v63  ;;  %v1775_v63 = vld [vmem:[#allocation8 + $0xc0] sm:$0xff] }
 0x6b2   :  { %1860 = vmatpush1.msra.mxu0 %v1809_v2  ;;  %v1834_v2 = vunpack.c.h.bf16 %v1776_v60  ;;  %v1831_v8 = vunpack.c.l.bf16 %v1775_v63  ;;  %v2468_v60 = vunpack.c.h.bf16 %v2594_v55 }
 0x6b3   :  { %1861 = vmatprep.subr.mxu0 %v1808_v5  ;;  %v1774_v5 = vld [vmem:[#allocation8 + $0xb8] sm:$0xff] }
 0x6b4   :  { %1862 = vmatpush1.msra.mxu0 %v1807_v6  ;;  %v1832_v6 = vunpack.c.h.bf16 %v1775_v63  ;;  %v1829_v11 = vunpack.c.l.bf16 %v1774_v5  ;;  %v2593_v63 = vld [vmem:[#allocation10 + $0x18] sm:$0xff]  }
 0x6b5   :  { %1863 = vmatprep.subr.mxu0 %v1806_v9  ;;  %v1773_v9 = vld [vmem:[#allocation8 + $0xb0] sm:$0xff] }
 0x6b6   :  { %1864 = vmatpush1.msra.mxu0 %v1805_v10  ;;  %v1830_v10 = vunpack.c.h.bf16 %v1774_v5  ;;  %v1827_v14 = vunpack.c.l.bf16 %v1773_v9  ;;  %v2464_v5 = vunpack.c.h.bf16 %v2593_v63 }
 0x6b7   :  { %1865 = vmatprep.subr.mxu0 %v1804_v12  ;;  %v1772_v12 = vld [vmem:[#allocation8 + $0xa8] sm:$0xff] }
 0x6b8   :  { %1866 = vmatpush1.msra.mxu0 %v1803_v13  ;;  %v1828_v13 = vunpack.c.h.bf16 %v1773_v9  ;;  %v1825_v18 = vunpack.c.l.bf16 %v1772_v12  ;;  %v2592_v9 = vld [vmem:[#allocation10 + $0x10] sm:$0xff]  }
 0x6b9   :  { %1867 = vmatprep.subr.mxu0 %v1802_v16  ;;  %v1771_v16 = vld [vmem:[#allocation8 + $0xa0] sm:$0xff] }
 0x6ba   :  { %1868 = vmatpush1.msra.mxu0 %v1801_v17  ;;  %v1826_v17 = vunpack.c.h.bf16 %v1772_v12  ;;  %v2460_v12 = vunpack.c.h.bf16 %v2592_v9 }
 0x6bb   :  { %1869 = vmatprep.subr.mxu0 %v1800_v19  ;;  %v1824_v19 = vunpack.c.h.bf16 %v1771_v16 }
 0x6bc   :  { %1870 = vmatpush1.msra.mxu0 %v1799_v20  ;;  %v1823_v20 = vunpack.c.l.bf16 %v1771_v16  ;;  %v2459_v16 = vunpack.c.l.bf16 %v2592_v9 }
 0x6bd   :  { %1871 = vmatprep.subr.mxu0 %v1798_v7  ;;  %v3614_v7 = vld [vmem:[#allocation2] sm:$0xff] }
 0x6be   :  { %1872 = vmatpush1.msra.mxu0 %v1797_v23  ;;  %v1550_v23 = vrot.slane %v3614_v7, %v1549_v22 }
 0x6bf   :  { %1873 = vmatprep.subr.mxu0 %v1796_v25 }
 0x6c0   :  { %1874 = vmatpush1.msra.mxu0 %v1795_v26 }
 0x6c1   :  { %1875 = vmatprep.subr.mxu0 %v1794_v32  ;;  %v1770_v32 = vld [vmem:[#allocation8 + $0x98] sm:$0xff] }
 0x6c2   :  { %1876 = vmatpush1.msra.mxu0 %v1793_v33  ;;  %v1822_v33 = vunpack.c.h.bf16 %v1770_v32  ;;  %v1821_v34 = vunpack.c.l.bf16 %v1770_v32 }
 0x6c3   :  { %1877 = vmatprep.subr.mxu0 %v1792_v15  ;;  %v1769_v15 = vld [vmem:[#allocation8 + $0x90] sm:$0xff] }
 0x6c4   :  { %1878 = vmatpush1.msra.mxu0 %v1791_v35  ;;  %v1820_v35 = vunpack.c.h.bf16 %v1769_v15  ;;  %v1819_v37 = vunpack.c.l.bf16 %v1769_v15 }
 0x6c5   :  { %1879 = vmatprep.subr.mxu0 %v1790_v38  ;;  %v1768_v38 = vld [vmem:[#allocation8 + $0x88] sm:$0xff] }
 0x6c6   :  { %1880 = vmatpush1.msra.mxu0 %v1789_v39  ;;  %v1818_v39 = vunpack.c.h.bf16 %v1768_v38  ;;  %v1817_v40 = vunpack.c.l.bf16 %v1768_v38 }
 0x6c7   :  { %1881 = vmatprep.subr.mxu0 %v1788_v41  ;;  %v1767_v41 = vld [vmem:[#allocation8 + $0x80] sm:$0xff] }
 0x6c8   :  { %1882 = vmatpush1.msra.mxu0 %v1787_v43  ;;  %v1815_v43 = vunpack.c.l.bf16 %v1767_v41  ;;  %v1816_v44 = vunpack.c.h.bf16 %v1767_v41 }
 0x6c9   :  { %1883 = vmatprep.subr.mxu0 %v1786_v29  ;;  %v2597_v29 = vld [vmem:[#allocation10 + $0x38] sm:$0xff]  }
 0x6ca   :  { %1884 = vmatpush1.msra.mxu0 %v1785_v61  ;;  %v2604_v61 = vld [vmem:[#allocation10 + $0x70] sm:$0xff]  }
 0x6cb   :  { %1885 = vmatprep.subr.mxu0 %v1784_v47  ;;  %v2480_v47 = vunpack.c.h.bf16 %v2597_v29 }
 0x6cc   :  { %1886 = vmatpush1.msra.mxu0 %v1783_v4 }
 0x6cd   :  { %1887 = vmatprep.subr.mxu0 %v1846_v49  ;;  %v2479_v49 = vunpack.c.l.bf16 %v2597_v29 }
 0x6ce   :  { %1888 = vmatpush2.msra.mxu0 %v1845_v42  ;;  %v2508_v42 = vunpack.c.h.bf16 %v2604_v61 }
 0x6cf   :  { %1889 = vmatprep.subr.mxu0 %v1844_v36  ;;  %v2603_v36 = vld [vmem:[#allocation10 + $0x68] sm:$0xff]  }
 0x6d0   :  { %1890 = vmatpush2.msra.mxu0 %v1843_v51  ;;  %v2507_v51 = vunpack.c.l.bf16 %v2604_v61 }
 0x6d1   :  { %1891 = vmatprep.subr.mxu0 %v1842_v52  ;;  %v2475_v52 = vunpack.c.l.bf16 %v2596_v48 }
 0x6d2   :  { %1892 = vmatpush2.msra.mxu0 %v1841_v53  ;;  %v2504_v53 = vunpack.c.h.bf16 %v2603_v36 }
 0x6d3   :  { %1893 = vmatprep.subr.mxu0 %v1840_v45  ;;  %v2602_v45 = vld [vmem:[#allocation10 + $0x60] sm:$0xff]  }
 0x6d4   :  { %1894 = vmatpush2.msra.mxu0 %v1839_v54  ;;  %v2503_v54 = vunpack.c.l.bf16 %v2603_v36  ;;  %v2611_v36 = vld [vmem:[#allocation11 + $0x30] sm:$0xff]  }
 0x6d5   :  { %1895 = vmatprep.subr.mxu0 %v1838_v56  ;;  %v2471_v56 = vunpack.c.l.bf16 %v2595_v57  ;;  %v2540_v57 = vunpack.c.h.bf16 %v2611_v36 }
 0x6d6   :  { %1896 = vmatpush2.msra.mxu0 %v1837_v59  ;;  %v2500_v59 = vunpack.c.h.bf16 %v2602_v45 }
 0x6d7   :  { %1897 = vmatprep.subr.mxu0 %v1836_v1  ;;  %v2601_v1 = vld [vmem:[#allocation10 + $0x58] sm:$0xff]  }
 0x6d8   :  { %1898 = vmatpush2.msra.mxu0 %v1835_v62  ;;  %v2499_v62 = vunpack.c.l.bf16 %v2602_v45  ;;  %v2609_v45 = vld [vmem:[#allocation11 + $0x20] sm:$0xff]  }
 0x6d9   :  { %1899 = vmatprep.subr.mxu0 %v1834_v2  ;;  %v2467_v2 = vunpack.c.l.bf16 %v2594_v55  ;;  %v2532_v55 = vunpack.c.h.bf16 %v2609_v45 }
 0x6da   :  { %1900 = vmatpush2.msra.mxu0 %v1833_v3  ;;  %v2496_v3 = vunpack.c.h.bf16 %v2601_v1 }
 0x6db   :  { %1901 = vmatprep.subr.mxu0 %v1832_v6  ;;  %v2600_v6 = vld [vmem:[#allocation10 + $0x50] sm:$0xff]  }
 0x6dc   :  { %1902 = vmatpush2.msra.mxu0 %v1831_v8  ;;  %v2495_v8 = vunpack.c.l.bf16 %v2601_v1  ;;  %v2607_v1 = vld [vmem:[#allocation11 + $0x10] sm:$0xff]  }
 0x6dd   :  { %1903 = vmatprep.subr.mxu0 %v1830_v10  ;;  %v2463_v10 = vunpack.c.l.bf16 %v2593_v63  ;;  %v2524_v63 = vunpack.c.h.bf16 %v2607_v1 }
 0x6de   :  { %1904 = vmatpush2.msra.mxu0 %v1829_v11  ;;  %v2492_v11 = vunpack.c.h.bf16 %v2600_v6 }
 0x6df   :  { %1905 = vmatprep.subr.mxu0 %v1828_v13  ;;  %v2599_v13 = vld [vmem:[#allocation10 + $0x48] sm:$0xff]  }
 0x6e0   :  { %1906 = vmatpush2.msra.mxu0 %v1827_v14  ;;  %v2491_v14 = vunpack.c.l.bf16 %v2600_v6  ;;  %v2487_v15 = vunpack.c.l.bf16 %v2599_v13  ;;  %v2514_v6 = vld [vmem:[#allocation11] sm:$0xff]  }
 0x6e1   :  { %1907 = vmatprep.subr.mxu0 %v1826_v17  ;;  %v2488_v17 = vunpack.c.h.bf16 %v2599_v13  ;;  %v2516_v9 = vunpack.c.h.bf16 %v2514_v6 }
 0x6e2   :  { %1908 = vmatpush2.msra.mxu0 %v1825_v18  ;;  %v1672_v18 = vsub.s32 5, %v3394_v27 }
 0x6e3   :  { %1909 = vmatprep.subr.mxu0 %v1824_v19 }
 0x6e4   :  { %1910 = vmatpush2.msra.mxu0 %v1823_v20  ;;  %v1673_v19 = vrot.slane %v3614_v7, %v1672_v18  ;;  %v3055_v20 = vld [vmem:[#allocation2 + $0x8] sm:$0xff] }
 0x6e5   :  { %1911 = vmatprep.subr.mxu0 %v1822_v33  ;;  %v1677_v22 = vrot.slane %v3055_v20, %v1672_v18  ;;  %v2591_v33 = vld [vmem:[#allocation10 + $0x8] sm:$0xff]  }
 0x6e6   :  { %1912 = vmatpush2.msra.mxu0 %v1821_v34  ;;  %v2456_v34 = vunpack.c.h.bf16 %v2591_v33 }
 0x6e7   :  { %1913 = vmatprep.subr.mxu0 %v1820_v35  ;;  %v2455_v35 = vunpack.c.l.bf16 %v2591_v33 }
 0x6e8   :  { %1914 = vmatpush2.msra.mxu0 %v1819_v37  ;;  %v2598_v37 = vld [vmem:[#allocation10 + $0x40] sm:$0xff]  }
 0x6e9   :  { %1915 = vmatprep.subr.mxu0 %v1818_v39  ;;  %v2484_v38 = vunpack.c.h.bf16 %v2598_v37  ;;  %v2450_v39 = vld [vmem:[#allocation10] sm:$0xff]   ;;  %v2483_v41 = vunpack.c.l.bf16 %v2598_v37 }
 0x6ea   :  { %1916 = vmatpush2.msra.mxu0 %v1817_v40  ;;  %v2452_v40 = vunpack.c.h.bf16 %v2450_v39 }
 0x6eb   :  { %1917 = vmatprep.subr.mxu0 %v1816_v44  ;;  %v1849_v44 = vsub.s32 6, %v3394_v27 }
 0x6ec   :  { %1918 = vmatpush2.msra.mxu0 %v1815_v43  ;;  %v2451_v43 = vunpack.c.l.bf16 %v2450_v39  ;;  %v2546_v39 = vld [vmem:[#allocation13] sm:$0xff]  }
 0x6ed   :  { %2966 = vmatprep.subr.mxu0 %v3241_v0  ;;  %v1854_v29 = vrot.slane %v3055_v20, %v1849_v44 }
 0x76d   :  { %v1617_v24 = vpop.f32.mrf.mxu0 }
 0x76e   :  { %v1618_v25 = vadd.f32 %v1617_v24, %v1550_v23 }
 0x76f   :  { %v2930_v26 = vpop.f32.mrf.mxu0 }
 0x770   :  { %v1621_v30 = vadd.f32 %v1618_v25, %v3468_v31  ;;  %v2605_v31 = vld [vmem:[#allocation10 + $0x78] sm:$0xff]  }
 0x771   :  { %v2512_v46 = vunpack.c.h.bf16 %v2605_v31  ;;  %v2511_v4 = vunpack.c.l.bf16 %v2605_v31  ;;  %v1850_v31 = vrot.slane %v3614_v7, %v1849_v44 }
 0x772   :  { %1743 = vmatmul.mubr.f32.vlgmr.msra.gmra.mxu1 %v1621_v30 }
 0x773   :  { %2695 = vmatprep.subr.mxu1 %v2512_v46 }
 0x774   :  { %2696 = vmatpush3.msra.mxu1 %v2480_v47 }
 0x775   :  { %2697 = vmatprep.subr.mxu1 %v2511_v4  ;;  %v2612_v4 = vld [vmem:[#allocation11 + $0x38] sm:$0xff]  }
 0x776   :  { %2698 = vmatpush3.msra.mxu1 %v2479_v49 }
 0x777   :  { %2699 = vmatprep.subr.mxu1 %v2508_v42  ;;  %v2544_v42 = vunpack.c.h.bf16 %v2612_v4 }
 0x778   :  { %2700 = vmatpush3.msra.mxu1 %v2476_v50 }
 0x779   :  { %2701 = vmatprep.subr.mxu1 %v2507_v51  ;;  %v2543_v51 = vunpack.c.l.bf16 %v2612_v4  ;;  %v140_v4 = vld [vmem:[#allocation2 + $0x18] sm:$0xff] }
 0x77a   :  { %2702 = vmatpush3.msra.mxu1 %v2475_v52  ;;  %v2610_v52 = vld [vmem:[#allocation11 + $0x28] sm:$0xff]  }
 0x77b   :  { %2703 = vmatprep.subr.mxu1 %v2504_v53  ;;  %v2539_v53 = vunpack.c.l.bf16 %v2611_v36 }
 0x77c   :  { %2704 = vmatpush3.msra.mxu1 %v2472_v58  ;;  %v2536_v58 = vunpack.c.h.bf16 %v2610_v52 }
 0x77d   :  { %2705 = vmatprep.subr.mxu1 %v2503_v54  ;;  %v2535_v54 = vunpack.c.l.bf16 %v2610_v52 }
 0x77e   :  { %2706 = vmatpush3.msra.mxu1 %v2471_v56  ;;  %v2608_v56 = vld [vmem:[#allocation11 + $0x18] sm:$0xff]  }
 0x77f   :  { %2707 = vmatprep.subr.mxu1 %v2500_v59  ;;  %v2531_v59 = vunpack.c.l.bf16 %v2609_v45 }
 0x780   :  { %2708 = vmatpush3.msra.mxu1 %v2468_v60  ;;  %v2528_v60 = vunpack.c.h.bf16 %v2608_v56 }
 0x781   :  { %2709 = vmatprep.subr.mxu1 %v2499_v62  ;;  %v2527_v62 = vunpack.c.l.bf16 %v2608_v56 }
 0x782   :  { %2710 = vmatpush3.msra.mxu1 %v2467_v2  ;;  %v2606_v2 = vld [vmem:[#allocation11 + $0x8] sm:$0xff]  }
 0x783   :  { %2711 = vmatprep.subr.mxu1 %v2496_v3  ;;  %v2523_v3 = vunpack.c.l.bf16 %v2607_v1 }
 0x784   :  { %2712 = vmatpush3.msra.mxu1 %v2464_v5  ;;  %v2520_v5 = vunpack.c.h.bf16 %v2606_v2 }
 0x785   :  { %2713 = vmatprep.subr.mxu1 %v2495_v8  ;;  %v2519_v8 = vunpack.c.l.bf16 %v2606_v2 }
 0x786   :  { %2714 = vmatpush3.msra.mxu1 %v2463_v10  ;;  %v2515_v10 = vunpack.c.l.bf16 %v2514_v6 }
 0x787   :  { %2715 = vmatprep.subr.mxu1 %v2492_v11  ;;  %v2067_v11 = vld [vmem:[%s3673_s1] sm:$0x3]  ;;  %s3243_s1 = smov [#allocation14]  }
 0x788   :  { %2716 = vmatpush3.msra.mxu1 %v2460_v12  ;;  %v2619_v12 = vld [vmem:[#allocation13 + $0x38] sm:$0xff]   ;;  %s2367_s4 = sshll.u32 %s3243_s1, 4  ;;  %s2368_s4 = int_to_ptr.vmem [resolvable:$true] %s2367_s4 }
 0x789   :  { %2717 = vmatprep.subr.mxu1 %v2491_v14  ;;  %v2576_v13 = vunpack.c.h.bf16 %v2619_v12  ;;  %v2575_v14 = vunpack.c.l.bf16 %v2619_v12  ;;  %s3196_s18 = scalar_lea.vmem %s2368_s4, 32  ;;  %p3201_p8 = scmp.lt.s32.totalorder %s2368_s4, %s2368_s4 }
 0x78a   :  { %2718 = vmatpush3.msra.mxu1 %v2459_v16  ;;  %v2618_v16 = vld [vmem:[#allocation13 + $0x30] sm:$0xff]   ;;  %p3197_p7 = scmp.ne.s32.totalorder %s2368_s4, %s3196_s18  ;;  %p3202_p9 = scmp.lt.s32.totalorder %s3196_s18, %s3196_s18 }
 0x78b   :  { %2719 = vmatprep.subr.mxu1 %v2488_v17  ;;  %v2572_v17 = vunpack.c.h.bf16 %v2618_v16  ;;  %v2571_v18 = vunpack.c.l.bf16 %v2618_v16 }
 0x78c   :  { %2720 = vmatpush3.msra.mxu1 %v2456_v34  ;;  %p3203_p10 = por %p3202_p9, %p3201_p8 }
 0x78d   :  { %2721 = vmatprep.subr.mxu1 %v2487_v15  ;;  %v2613_v15 = vld [vmem:[#allocation13 + $0x8] sm:$0xff]  }
 0x78e   :  { %2722 = vmatpush3.msra.mxu1 %v2455_v35  ;;  %v2552_v37 = vunpack.c.h.bf16 %v2613_v15  ;;  %p3204_p11 = pnand %p3203_p10, %p3197_p7 }
 0x78f   :  { %2723 = vmatprep.subr.mxu1 %v2484_v38  ;;  %v2551_v38 = vunpack.c.l.bf16 %v2613_v15 }
 0x790   :  { %2724 = vmatpush3.msra.mxu1 %v2452_v40  ;;  %v2548_v40 = vunpack.c.h.bf16 %v2546_v39 }
 0x791   :  { %2725 = vmatprep.subr.mxu1 %v2483_v41  ;;  %v2547_v41 = vunpack.c.l.bf16 %v2546_v39 }
 0x792   :  { %2726 = vmatpush3.msra.mxu1 %v2451_v43  ;;  %v1994_v43 = vsub.s32 7, %v3394_v27 }
 0x793   :  { %2931 = vmatprep.subr.mxu1 %v3241_v0 }
 0x832   :  { %v1744_v23 = vpop.f32.mrf.mxu1 }
 0x833   :  { %v1745_v24 = vadd.f32 %v1744_v23, %v1673_v19  ;;  %v2617_v19 = vld [vmem:[#allocation13 + $0x28] sm:$0xff]  }
 0x834   :  { %v1746_v25 = vpop.f32.mrf.mxu1  ;;  %v2568_v20 = vunpack.c.h.bf16 %v2617_v19  ;;  %v2567_v23 = vunpack.c.l.bf16 %v2617_v19 }
 0x835   :  { %v1747_v26 = vadd.f32 %v1746_v25, %v1677_v22  ;;  %v1749_v32 = vmax.f32 %v1745_v24, 0.0  ;;  %v2616_v22 = vld [vmem:[#allocation13 + $0x20] sm:$0xff]   ;;  %v2615_v25 = vld [vmem:[#allocation13 + $0x18] sm:$0xff]  }
 0x836   :  { %v2564_v24 = vunpack.c.h.bf16 %v2616_v22  ;;  %v2559_v33 = vunpack.c.l.bf16 %v2615_v25 }
 0x837   :  { %v1750_v30 = vmax.f32 %v1747_v26, 0.0  ;;  %v2563_v26 = vunpack.c.l.bf16 %v2616_v22 }
 0x839   :  { %1919 = vmatprep.mubr.f32.mxu0 %v1750_v30  ;;  %v2560_v30 = vunpack.c.h.bf16 %v2615_v25 }
 0x83a   :  { %1920 = vmatmul.mubr.f32.vlgmr.msra.gmra.mxu0 %v1749_v32  ;;  %v2614_v32 = vld [vmem:[#allocation13 + $0x10] sm:$0xff]  }
 0x83b   :  { %2998 = vmatprep.mubr.msk.f32.mxu0 %vm3242_vm0, %v3241_v0  ;;  %2967 = vmatpush3.msra.mxu0 %v2576_v13  ;;  %v2556_v34 = vunpack.c.h.bf16 %v2614_v32  ;;  %v2555_v35 = vunpack.c.l.bf16 %v2614_v32 }
 0x83c   :  { %2968 = vmatprep.subr.mxu0 %v3241_v0 }
 0x83d   :  { %2969 = vmatpush3.msra.mxu0 %v2575_v14 }
 0x83e   :  { %2970 = vmatprep.subr.mxu0 %v3241_v0 }
 0x83f   :  { %2971 = vmatpush3.msra.mxu0 %v2572_v17 }
 0x840   :  { %2972 = vmatprep.subr.mxu0 %v3241_v0 }
 0x841   :  { %2973 = vmatpush3.msra.mxu0 %v2571_v18 }
 0x842   :  { %2974 = vmatprep.subr.mxu0 %v3241_v0 }
 0x843   :  { %2975 = vmatpush3.msra.mxu0 %v2568_v20 }
 0x844   :  { %2976 = vmatprep.subr.mxu0 %v3241_v0 }
 0x845   :  { %2977 = vmatpush3.msra.mxu0 %v2567_v23 }
 0x846   :  { %2978 = vmatprep.subr.mxu0 %v3241_v0 }
 0x847   :  { %2979 = vmatpush3.msra.mxu0 %v2564_v24 }
 0x848   :  { %2980 = vmatprep.subr.mxu0 %v3241_v0 }
 0x849   :  { %2981 = vmatpush3.msra.mxu0 %v2563_v26 }
 0x84a   :  { %2982 = vmatprep.subr.mxu0 %v3241_v0 }
 0x84b   :  { %2983 = vmatpush3.msra.mxu0 %v2560_v30 }
 0x84c   :  { %2984 = vmatprep.subr.mxu0 %v3241_v0 }
 0x84d   :  { %2985 = vmatpush3.msra.mxu0 %v2559_v33 }
 0x84e   :  { %2986 = vmatprep.subr.mxu0 %v3241_v0 }
 0x84f   :  { %2987 = vmatpush3.msra.mxu0 %v2556_v34 }
 0x850   :  { %2988 = vmatprep.subr.mxu0 %v3241_v0 }
 0x851   :  { %2989 = vmatpush3.msra.mxu0 %v2555_v35 }
 0x852   :  { %2990 = vmatprep.subr.mxu0 %v3241_v0 }
 0x853   :  { %2991 = vmatpush3.msra.mxu0 %v2552_v37 }
 0x854   :  { %2992 = vmatprep.subr.mxu0 %v3241_v0 }
 0x855   :  { %2993 = vmatpush3.msra.mxu0 %v2551_v38 }
 0x856   :  { %2994 = vmatprep.subr.mxu0 %v3241_v0 }
 0x857   :  { %2995 = vmatpush3.msra.mxu0 %v2548_v40 }
 0x858   :  { %2996 = vmatprep.subr.mxu0 %v3241_v0 }
 0x859   :  { %2997 = vmatpush3.msra.mxu0 %v2547_v41 }
 0x8fa   :  { %v1921_v61 = vpop.f32.mrf.mxu0 }
 0x8fb   :  { %v1922_v46 = vadd.f32 %v1921_v61, %v1850_v31  ;;  %v1995_v31 = vrot.slane %v3614_v7, %v1994_v43 }
 0x8fc   :  { %v1923_v47 = vpop.f32.mrf.mxu0 }
 0x8fd   :  { %v1924_v48 = vadd.f32 %v1923_v47, %v1854_v29  ;;  %v1926_v50 = vmax.f32 %v1922_v46, 0.0 }
 0x8ff   :  { %v1927_v49 = vmax.f32 %v1924_v48, 0.0  ;;  %v2103_v48 = vrot.slane %v140_v4, %v3397_v28 }
 0x901   :  { %2060 = vmatprep.mubr.f32.mxu1 %v1927_v49 }
 0x902   :  { %2061 = vmatmul.mubr.f32.vlgmr.msra.gmra.mxu1 %v1926_v50 }
 0x903   :  { %2932 = vmatpush3.msra.mxu1 %v2544_v42  ;;  %2963 = vmatprep.mubr.msk.f32.mxu1 %vm3242_vm0, %v3241_v0 }
 0x904   :  { %2933 = vmatprep.subr.mxu1 %v3241_v0 }
 0x905   :  { %2934 = vmatpush3.msra.mxu1 %v2543_v51 }
 0x906   :  { %2935 = vmatprep.subr.mxu1 %v3241_v0 }
 0x907   :  { %2936 = vmatpush3.msra.mxu1 %v2540_v57 }
 0x908   :  { %2937 = vmatprep.subr.mxu1 %v3241_v0 }
 0x909   :  { %2938 = vmatpush3.msra.mxu1 %v2539_v53 }
 0x90a   :  { %2939 = vmatprep.subr.mxu1 %v3241_v0 }
 0x90b   :  { %2940 = vmatpush3.msra.mxu1 %v2536_v58 }
 0x90c   :  { %2941 = vmatprep.subr.mxu1 %v3241_v0 }
 0x90d   :  { %2942 = vmatpush3.msra.mxu1 %v2535_v54 }
 0x90e   :  { %2943 = vmatprep.subr.mxu1 %v3241_v0 }
 0x90f   :  { %2944 = vmatpush3.msra.mxu1 %v2532_v55 }
 0x910   :  { %2945 = vmatprep.subr.mxu1 %v3241_v0 }
 0x911   :  { %2946 = vmatpush3.msra.mxu1 %v2531_v59 }
 0x912   :  { %2947 = vmatprep.subr.mxu1 %v3241_v0 }
 0x913   :  { %2948 = vmatpush3.msra.mxu1 %v2528_v60 }
 0x914   :  { %2949 = vmatprep.subr.mxu1 %v3241_v0 }
 0x915   :  { %2950 = vmatpush3.msra.mxu1 %v2527_v62 }
 0x916   :  { %2951 = vmatprep.subr.mxu1 %v3241_v0 }
 0x917   :  { %2952 = vmatpush3.msra.mxu1 %v2524_v63 }
 0x918   :  { %2953 = vmatprep.subr.mxu1 %v3241_v0 }
 0x919   :  { %2954 = vmatpush3.msra.mxu1 %v2523_v3 }
 0x91a   :  { %2955 = vmatprep.subr.mxu1 %v3241_v0 }
 0x91b   :  { %2956 = vmatpush3.msra.mxu1 %v2520_v5 }
 0x91c   :  { %2957 = vmatprep.subr.mxu1 %v3241_v0 }
 0x91d   :  { %2958 = vmatpush3.msra.mxu1 %v2519_v8 }
 0x91e   :  { %2959 = vmatprep.subr.mxu1 %v3241_v0 }
 0x91f   :  { %2960 = vmatpush3.msra.mxu1 %v2516_v9 }
 0x920   :  { %2961 = vmatprep.subr.mxu1 %v3241_v0 }
 0x921   :  { %2962 = vmatpush3.msra.mxu1 %v2515_v10 }
 0x922   :  { %2964 = vmatmul.mubr.f32.vlgmr.msra.gmra.mxu1 %v2067_v11  ;;  %3001 = vmatprep.subr.mxu1 %v3241_v0 }
 0x923   :  { %3003 = vmatprep.mubr.msk.f32.mxu1 %vm3242_vm0, %v3241_v0  ;;  %v2210_v0 = vrot.slane %v140_v4, %v290_v21 }
 0x9c2   :  { %v2727_v44 = vpop.f32.mrf.mxu1 }
 0x9c4   :  { %v2728_v29 = vpop.f32.mrf.mxu1 }
 0x9c5   :  { %v2729_v61 = vadd.f32 %v2728_v29, %v2727_v44 }
 0x9c7   :  { %v2063_v46 = vadd.f32 %v2729_v61, %v1995_v31 }
 0x9c9   :  { %v2066_v47 = vmax.f32 %v2063_v46, 0.0 }
 0x9cb   :  { %3002 = vmatpush3.xpose.msra.mxu1 %v2066_v47 }
 0x9e2   :  { %v2170_v49 = vpop.f32.mrf.mxu1 }
 0x9e3   :  { %v2171_v42 = vadd.f32 %v2170_v49, %v2103_v48 }
 0x9e4   :  { %v2965_v50 = vpop.f32.mrf.mxu1 }
 0x9e5   :  { %v2174_v36 = vmax.f32 %v2171_v42, 0.0 }
 0x9e7   :  { %2999 = vmatmul.mubr.f32.vlgmr.msra.gmra.mxu0 %v2174_v36 }
 0xaa7   :  { %v2277_v51 = vpop.f32.mrf.mxu0 }
 0xaa8   :  { %v2278_v57 = vadd.f32 %v2277_v51, %v2210_v0 }
 0xaa9   :  { %v3000_v52 = vpop.f32.mrf.mxu0 }
 0xaaa   :  { %v2281_v7 = vmul.f32 %v2278_v57, %v2278_v57 }
 0xaac   :  { %v2283_v53 = vsel %vm2282_vm3, %v2281_v7, 0.0 }
 0xaad   :  { %2284 = vadd.xlane.f32.xlu1 %v2283_v53 }
 0xb36   :  { %v2285_v58 = vpop.xlane.xlu1 %2284 }
 0xb37   :  { %v2286_v45 = vmax.f32 %v2285_v58, 1e-24 }
 0xb39   :  { %3052 = vrsqrt.f32 %v2286_v45 }
 0xb46   :  { %v3053_v54 = vpop.eup %3052 }
 0xb47   :  { %v2288_v28 = vmul.f32 %v3053_v54, %v2278_v57 }
 0xb49   :  { %3004 = vmatmul.mubr.f32.vlgmr.msra.gmra.mxu1 %v2288_v28 }
 0xc09   :  { %v2355_v55 = vpop.f32.mrf.mxu1 }
 0xc0a   :  { %2360 = vst.msk [vmem:[#allocation14] sm:$0x3] %vm2359_vm4, %v2355_v55 }
 0xc0b   :  { %v3005_v27 = vpop.f32.mrf.mxu1 }
 0xc0c   :  { %3207 = shalt.err (!%p3204_p11)
}
 0xc0d   :  { %2370 = dma.vmem_to_hbm [thread:$0]  %s2368_s4, 32, %s3684_s12, [#allocation4]  }
 0xc0e   :  { %3224 = dma.done.wait [#allocation4], 32  }
 0xc0f   :  { %3225 = vsyncadd [#allocation4], 4294967264 }
 0xc10   :  { %2374 = vsyncpa [#allocation3], 1 }
 0xc11   :  { %2375 = vsyncpa [#allocation6], 1 }
 0xc12   :  { %2376 = vsyncpa [#allocation9], 1 }
 0xc13   :  { %2377 = vsyncpa [#allocation12], 1 }
 0xc14   :  { %2378 = vsyncpa [#allocation4], 1 }

</bundles_post_ra>
